<compile_context>
chip_gen: v5e
topology: v5e:2x2
jax: 0.10.0
libtpu: 0.0.40
codegen_flags: <defaults>
</compile_context>

<pallas_src>
import functools

import jax
import jax.numpy as jnp
from jax import lax
from jax.experimental import pallas as pl
from jax.experimental.pallas import tpu as pltpu

BN_EPS = 1e-5


def _shift(v, q, size):
    """result[:, p] = v[:, (p + q) mod size]  (wrapped lanes are masked by callers)."""
    q = q % size
    if q == 0:
        return v
    return pltpu.roll(v, shift=size - q, axis=1)


def _encoder_kernel(*refs, layer_dims, H0, W0, pool, is_context, out_size):
    n_layers = len(layer_dims)
    x_ref = refs[0]
    coords_ref = refs[1]
    out_ref = refs[2 + 2 * n_layers]
    patch_ref = refs[3 + 2 * n_layers]
    S = H0 * W0

    # Per-lane (row, col) coordinates of the flattened spatial axis (precomputed
    # host-side to avoid in-kernel integer div/mod).
    yy = coords_ref[pl.ds(0, 1), :]          # (1, S) int32
    xx = coords_ref[pl.ds(1, 1), :]          # (1, S) int32

    a = x_ref[0].astype(jnp.float32)         # (C0, S): channels on sublanes, spatial on lanes
    dil = 1                                  # current spatial dilation of valid lanes
    Hl, Wl = H0, W0                          # current (undilated) feature-map size

    for li, (cin, cout, k) in enumerate(layer_dims):
        w_ref = refs[2 + 2 * li]             # (cout, k*k*cin)  with BN scale folded in
        b_ref = refs[3 + 2 * li]             # (cout, 1)        conv bias + BN folded
        pad = (k - 1) // 2

        # ---- im2col: K*K dilated taps -> VMEM scratch (k*k*cin, S) ----------
        t = 0
        for oy in range(-pad, pad + 1):
            row_ok = (yy + dil * oy >= 0) & (yy + dil * oy < dil * Hl)
            for ox in range(-pad, pad + 1):
                col_ok = (xx + dil * ox >= 0) & (xx + dil * ox < dil * Wl)
                src = _shift(a, dil * (oy * W0 + ox), S)
                patch_ref[pl.ds(t * cin, cin), :] = jnp.where(row_ok & col_ok, src, 0.0)
                t += 1

        # ---- conv as a single MXU matmul, + folded bias, + ReLU -------------
        patch = patch_ref[pl.ds(0, k * k * cin), :]             # (k*k*cin, S)
        acc = jnp.dot(w_ref[...], patch,
                      preferred_element_type=jnp.float32)       # (cout, S)
        acc = jnp.maximum(acc + b_ref[...], 0.0)

        # ---- MaxPool2d(pool) kept in dilated storage (no lane compaction) ---
        m = acc
        for dy in range(pool):
            for dx in range(pool):
                if dy or dx:
                    m = jnp.maximum(m, _shift(acc, dil * (dy * W0 + dx), S))
        a = m
        dil *= pool
        Hl //= pool
        Wl //= pool

    c_last = layer_dims[-1][1]

    shift_cache = {}

    def shifted_a(q):
        if q not in shift_cache:
            shift_cache[q] = _shift(a, q, S)
        return shift_cache[q]

    wmax_cache = {}

    def window_max(nr, nc):
        # max over an (nr x nc) dilated window, computed once per window shape.
        if (nr, nc) not in wmax_cache:
            m = None
            for dr in range(nr):
                for dc in range(nc):
                    v = shifted_a(dil * (dr * W0 + dc))
                    m = v if m is None else jnp.maximum(m, v)
            wmax_cache[(nr, nc)] = m
        return wmax_cache[(nr, nc)]

    olane = lax.broadcasted_iota(jnp.int32, (1, S), 1)

    if is_context:
        # AdaptiveMaxPool2d(out_size): window i = [floor(i*L/o), ceil((i+1)*L/o))
        ow = out_size * out_size
        out_acc = jnp.zeros((c_last, S), jnp.float32)
        for i in range(out_size):
            r0 = (i * Hl) // out_size
            r1 = -(-((i + 1) * Hl) // out_size)
            for j in range(out_size):
                c0 = (j * Wl) // out_size
                c1 = -(-((j + 1) * Wl) // out_size)
                oidx = i * out_size + j
                wm = window_max(r1 - r0, c1 - c0)
                # window max lives at the window's anchor lane; move it to its
                # output lane and merge (full-lane select, single narrow store).
                anchor = dil * (r0 * W0 + c0)
                placed = _shift(wm, anchor - oidx, S)
                out_acc = jnp.where(olane == oidx, placed, out_acc)
        out_ref[0] = out_acc[:, :ow]
    else:
        # Compact the dilated (Hl, Wl) map into contiguous lanes, single store.
        ow = Hl * Wl
        out_acc = jnp.zeros((c_last, S), jnp.float32)
        for r in range(Hl):
            for c in range(Wl):
                oidx = r * Wl + c
                placed = _shift(a, dil * (r * W0 + c) - oidx, S)
                out_acc = jnp.where(olane == oidx, placed, out_acc)
        out_ref[0] = out_acc[:, :ow]


def encoder_forward(x_nchw, params, is_context=True, pool=2, out_size=3):
    """params: list of (w[Cout,Cin,K,K], b, gamma, beta, running_mean, running_var)."""
    N, C0, H, W = x_nchw.shape
    S = H * W

    layer_dims = []
    flat_params = []
    Hl, Wl = H, W
    for (w, b, gamma, beta, mean, var) in params:
        cout, cin, k, k2 = w.shape
        assert k == k2
        scale = gamma / jnp.sqrt(var + BN_EPS)                    # BN (eval) fold
        bias = ((b - mean) * scale + beta).reshape(cout, 1).astype(jnp.float32)
        # im2col weight: (cout, cin, k, k) -> (cout, k*k*cin), tap-major, BN scale folded.
        w2 = (jnp.transpose(w, (0, 2, 3, 1)).reshape(cout, k * k * cin)
              * scale[:, None]).astype(jnp.float32)
        flat_params += [w2, bias]
        layer_dims.append((cin, cout, k))
        # TODO(synk): PyTorch MaxPool2d floors odd sizes; the dilated-storage
        # scheme assumes pool divides the feature size (true for 16x16, 2 layers).
        assert Hl % pool == 0 and Wl % pool == 0
        Hl //= pool
        Wl //= pool
    c_last = layer_dims[-1][1]

    out_lanes = out_size * out_size if is_context else Hl * Wl
    max_patch_rows = max(k * k * cin for (cin, _, k) in layer_dims)

    # Per-lane (row, col) coordinates of the flattened spatial axis.
    lane = jnp.arange(S, dtype=jnp.int32)
    coords = jnp.stack([lane // W, lane % W]).astype(jnp.int32)   # (2, S)

    kernel = functools.partial(
        _encoder_kernel, layer_dims=tuple(layer_dims), H0=H, W0=W,
        pool=pool, is_context=is_context, out_size=out_size)

    in_specs = [pl.BlockSpec((1, C0, S), lambda n: (n, 0, 0)),
                pl.BlockSpec((2, S), lambda n: (0, 0))]
    for (cin, cout, k) in layer_dims:
        in_specs.append(pl.BlockSpec((cout, k * k * cin), lambda n: (0, 0)))
        in_specs.append(pl.BlockSpec((cout, 1), lambda n: (0, 0)))

    out = pl.pallas_call(
        kernel,
        out_shape=jax.ShapeDtypeStruct((N, c_last, out_lanes), jnp.float32),
        grid=(N,),
        in_specs=in_specs,
        out_specs=pl.BlockSpec((1, c_last, out_lanes), lambda n: (n, 0, 0)),
        scratch_shapes=[pltpu.VMEM((max_patch_rows, S), jnp.float32)],
        compiler_params=pltpu.CompilerParams(
            dimension_semantics=("parallel",)),
    )(x_nchw.reshape(N, C0, S).astype(jnp.float32), coords, *flat_params)

    if is_context:
        return out.reshape(N, c_last, out_size, out_size)
    return out.reshape(N, c_last, Hl, Wl)


# ---------------------------------------------------------------------------
# Pure-JAX reference (matches the PyTorch module, eval-mode BN) for checking.
# ---------------------------------------------------------------------------
def encoder_reference(x_nchw, params, is_context=True, pool=2, out_size=3):
    x = x_nchw.astype(jnp.float32)
    for (w, b, gamma, beta, mean, var) in params:
        y = lax.conv_general_dilated(
            x, w, (1, 1), "SAME", dimension_numbers=("NCHW", "OIHW", "NCHW"))
        y = y + b[None, :, None, None]
        y = ((y - mean[None, :, None, None]) /
             jnp.sqrt(var[None, :, None, None] + BN_EPS)
             * gamma[None, :, None, None] + beta[None, :, None, None])
        y = jnp.maximum(y, 0.0)
        x = lax.reduce_window(y, -jnp.inf, lax.max,
                              (1, 1, pool, pool), (1, 1, pool, pool), "VALID")
    if is_context:
        N, C, Hf, Wf = x.shape
        rows = []
        for i in range(out_size):
            h0, h1 = (i * Hf) // out_size, -(-((i + 1) * Hf) // out_size)
            cols = []
            for j in range(out_size):
                w0, w1 = (j * Wf) // out_size, -(-((j + 1) * Wf) // out_size)
                cols.append(jnp.max(x[:, :, h0:h1, w0:w1], axis=(2, 3)))
            rows.append(jnp.stack(cols, axis=-1))
        x = jnp.stack(rows, axis=-2)
    return x


def init_params(key, num_kernels, kernel_size=3):
    params = []
    for i in range(len(num_kernels) - 1):
        cin, cout = num_kernels[i], num_kernels[i + 1]
        key, k1, k2, k3, k4, k5, k6 = jax.random.split(key, 7)
        fan_in = cin * kernel_size * kernel_size
        w = jax.random.normal(k1, (cout, cin, kernel_size, kernel_size),
                              jnp.float32) / jnp.sqrt(fan_in)
        b = 0.1 * jax.random.normal(k2, (cout,), jnp.float32)
        gamma = 1.0 + 0.1 * jax.random.normal(k3, (cout,), jnp.float32)
        beta = 0.1 * jax.random.normal(k4, (cout,), jnp.float32)
        mean = 0.1 * jax.random.normal(k5, (cout,), jnp.float32)
        var = jnp.abs(1.0 + 0.1 * jax.random.normal(k6, (cout,), jnp.float32))
        params.append((w, b, gamma, beta, mean, var))
    return params


if __name__ == "__main__":
    key = jax.random.PRNGKey(0)
    kx, kp = jax.random.split(key)

    num_kernels = [4, 8, 16]                                 # Encoder([4, 8, 16])
    x = jax.random.normal(kx, (2, 4, 16, 16), jnp.float32)   # NCHW input
    params = init_params(kp, num_kernels)

    fwd = jax.jit(encoder_forward, static_argnames=("is_context", "pool", "out_size"))
    out = fwd(x, params, is_context=True)
    out = jax.block_until_ready(out)

    ref = encoder_reference(x, params, is_context=True)
    assert out.shape == (2, 16, 3, 3), out.shape
    max_err = float(jnp.max(jnp.abs(out - ref)))
    assert jnp.allclose(out, ref, atol=1e-4, rtol=1e-4), max_err

    print("KERNEL_OK")
</pallas_src>

<mosaic_0001>
module attributes {stable_mosaic.version = 11 : i64} {
  func.func @_encoder_kernel(%arg0: i32, %arg1: memref<1x4x256xf32, #tpu.memory_space<vmem>>, %arg2: memref<2x256xi32, #tpu.memory_space<vmem>>, %arg3: memref<8x36xf32, #tpu.memory_space<vmem>>, %arg4: memref<8x1xf32, #tpu.memory_space<vmem>>, %arg5: memref<16x72xf32, #tpu.memory_space<vmem>>, %arg6: memref<16x1xf32, #tpu.memory_space<vmem>>, %arg7: memref<1x16x9xf32, #tpu.memory_space<vmem>>, %arg8: memref<72x256xf32, #tpu.memory_space<vmem>>) attributes {dimension_semantics = [#tpu.dimension_semantics<parallel>], iteration_bounds = array<i64: 2>, scalar_prefetch = 0 : i64, scratch_operands = 1 : i64, tpu.core_type = #tpu.core_type<tc>, window_params = [{transform_indices = @transform_0, window_bounds = array<i64: 1, 4, 256>}, {pipeline_mode = #tpu.pipeline_mode<synchronous>, transform_indices = @transform_1, window_bounds = array<i64: 2, 256>}, {pipeline_mode = #tpu.pipeline_mode<synchronous>, transform_indices = @transform_2, window_bounds = array<i64: 8, 36>}, {pipeline_mode = #tpu.pipeline_mode<synchronous>, transform_indices = @transform_3, window_bounds = array<i64: 8, 1>}, {pipeline_mode = #tpu.pipeline_mode<synchronous>, transform_indices = @transform_4, window_bounds = array<i64: 16, 72>}, {pipeline_mode = #tpu.pipeline_mode<synchronous>, transform_indices = @transform_5, window_bounds = array<i64: 16, 1>}, {transform_indices = @transform_6, window_bounds = array<i64: 1, 16, 9>}]} {
    %c0 = arith.constant 0 : index
    %c0_0 = arith.constant 0 : index
    %0 = vector.load %arg2[%c0, %c0_0] : memref<2x256xi32, #tpu.memory_space<vmem>>, vector<1x256xi32>
    %c1 = arith.constant 1 : index
    %c0_1 = arith.constant 0 : index
    %1 = vector.load %arg2[%c1, %c0_1] : memref<2x256xi32, #tpu.memory_space<vmem>>, vector<1x256xi32>
    %c0_2 = arith.constant 0 : index
    %c0_3 = arith.constant 0 : index
    %c0_4 = arith.constant 0 : index
    %2 = vector.load %arg1[%c0_2, %c0_3, %c0_4] : memref<1x4x256xf32, #tpu.memory_space<vmem>>, vector<1x4x256xf32>
    %3 = vector.shape_cast %2 : vector<1x4x256xf32> to vector<4x256xf32>
    %c-1_i32 = arith.constant -1 : i32
    %4 = vector.broadcast %c-1_i32 : i32 to vector<1x256xi32>
    %5 = arith.addi %0, %4 : vector<1x256xi32>
    %c0_i32 = arith.constant 0 : i32
    %6 = vector.broadcast %c0_i32 : i32 to vector<1x256xi32>
    %7 = arith.cmpi sge, %5, %6 : vector<1x256xi32>
    %c-1_i32_5 = arith.constant -1 : i32
    %8 = vector.broadcast %c-1_i32_5 : i32 to vector<1x256xi32>
    %9 = arith.addi %0, %8 : vector<1x256xi32>
    %c16_i32 = arith.constant 16 : i32
    %10 = vector.broadcast %c16_i32 : i32 to vector<1x256xi32>
    %11 = arith.cmpi slt, %9, %10 : vector<1x256xi32>
    %12 = arith.andi %7, %11 : vector<1x256xi1>
    %c-1_i32_6 = arith.constant -1 : i32
    %13 = vector.broadcast %c-1_i32_6 : i32 to vector<1x256xi32>
    %14 = arith.addi %1, %13 : vector<1x256xi32>
    %c0_i32_7 = arith.constant 0 : i32
    %15 = vector.broadcast %c0_i32_7 : i32 to vector<1x256xi32>
    %16 = arith.cmpi sge, %14, %15 : vector<1x256xi32>
    %c-1_i32_8 = arith.constant -1 : i32
    %17 = vector.broadcast %c-1_i32_8 : i32 to vector<1x256xi32>
    %18 = arith.addi %1, %17 : vector<1x256xi32>
    %c16_i32_9 = arith.constant 16 : i32
    %19 = vector.broadcast %c16_i32_9 : i32 to vector<1x256xi32>
    %20 = arith.cmpi slt, %18, %19 : vector<1x256xi32>
    %21 = arith.andi %16, %20 : vector<1x256xi1>
    %c17_i32 = arith.constant 17 : i32
    %22 = tpu.dynamic_rotate %3 by %c17_i32 dim 1 : vector<4x256xf32>, i32 -> vector<4x256xf32>
    %23 = arith.andi %12, %21 : vector<1x256xi1>
    %cst = arith.constant 0.000000e+00 : f32
    %24 = vector.shape_cast %23 : vector<1x256xi1> to vector<1x256xi1>
    %25 = vector.broadcast %24 : vector<1x256xi1> to vector<4x256xi1>
    %26 = vector.broadcast %cst : f32 to vector<4x256xf32>
    %27 = arith.select %25, %22, %26 : vector<4x256xi1>, vector<4x256xf32>
    %c0_10 = arith.constant 0 : index
    %c0_11 = arith.constant 0 : index
    %28 = vector.load %arg8[%c0_10, %c0_11] : memref<72x256xf32, #tpu.memory_space<vmem>>, vector<4x256xf32>
    tpu.vector_store %arg8[%c0_10, %c0_11], %27 {strides = array<i32>} : memref<72x256xf32, #tpu.memory_space<vmem>>, vector<4x256xf32>,
    %c0_i32_12 = arith.constant 0 : i32
    %29 = vector.broadcast %c0_i32_12 : i32 to vector<1x256xi32>
    %30 = arith.addi %1, %29 : vector<1x256xi32>
    %c0_i32_13 = arith.constant 0 : i32
    %31 = vector.broadcast %c0_i32_13 : i32 to vector<1x256xi32>
    %32 = arith.cmpi sge, %30, %31 : vector<1x256xi32>
    %c0_i32_14 = arith.constant 0 : i32
    %33 = vector.broadcast %c0_i32_14 : i32 to vector<1x256xi32>
    %34 = arith.addi %1, %33 : vector<1x256xi32>
    %c16_i32_15 = arith.constant 16 : i32
    %35 = vector.broadcast %c16_i32_15 : i32 to vector<1x256xi32>
    %36 = arith.cmpi slt, %34, %35 : vector<1x256xi32>
    %37 = arith.andi %32, %36 : vector<1x256xi1>
    %c16_i32_16 = arith.constant 16 : i32
    %38 = tpu.dynamic_rotate %3 by %c16_i32_16 dim 1 : vector<4x256xf32>, i32 -> vector<4x256xf32>
    %39 = arith.andi %12, %37 : vector<1x256xi1>
    %cst_17 = arith.constant 0.000000e+00 : f32
    %40 = vector.shape_cast %39 : vector<1x256xi1> to vector<1x256xi1>
    %41 = vector.broadcast %40 : vector<1x256xi1> to vector<4x256xi1>
    %42 = vector.broadcast %cst_17 : f32 to vector<4x256xf32>
    %43 = arith.select %41, %38, %42 : vector<4x256xi1>, vector<4x256xf32>
    %c4 = arith.constant 4 : index
    %c0_18 = arith.constant 0 : index
    %44 = vector.load %arg8[%c4, %c0_18] : memref<72x256xf32, #tpu.memory_space<vmem>>, vector<4x256xf32>
    tpu.vector_store %arg8[%c4, %c0_18], %43 {strides = array<i32>} : memref<72x256xf32, #tpu.memory_space<vmem>>, vector<4x256xf32>,
    %c1_i32 = arith.constant 1 : i32
    %45 = vector.broadcast %c1_i32 : i32 to vector<1x256xi32>
    %46 = arith.addi %1, %45 : vector<1x256xi32>
    %c0_i32_19 = arith.constant 0 : i32
    %47 = vector.broadcast %c0_i32_19 : i32 to vector<1x256xi32>
    %48 = arith.cmpi sge, %46, %47 : vector<1x256xi32>
    %c1_i32_20 = arith.constant 1 : i32
    %49 = vector.broadcast %c1_i32_20 : i32 to vector<1x256xi32>
    %50 = arith.addi %1, %49 : vector<1x256xi32>
    %c16_i32_21 = arith.constant 16 : i32
    %51 = vector.broadcast %c16_i32_21 : i32 to vector<1x256xi32>
    %52 = arith.cmpi slt, %50, %51 : vector<1x256xi32>
    %53 = arith.andi %48, %52 : vector<1x256xi1>
    %c15_i32 = arith.constant 15 : i32
    %54 = tpu.dynamic_rotate %3 by %c15_i32 dim 1 : vector<4x256xf32>, i32 -> vector<4x256xf32>
    %55 = arith.andi %12, %53 : vector<1x256xi1>
    %cst_22 = arith.constant 0.000000e+00 : f32
    %56 = vector.shape_cast %55 : vector<1x256xi1> to vector<1x256xi1>
    %57 = vector.broadcast %56 : vector<1x256xi1> to vector<4x256xi1>
    %58 = vector.broadcast %cst_22 : f32 to vector<4x256xf32>
    %59 = arith.select %57, %54, %58 : vector<4x256xi1>, vector<4x256xf32>
    %c8 = arith.constant 8 : index
    %c0_23 = arith.constant 0 : index
    %60 = vector.load %arg8[%c8, %c0_23] : memref<72x256xf32, #tpu.memory_space<vmem>>, vector<4x256xf32>
    tpu.vector_store %arg8[%c8, %c0_23], %59 {strides = array<i32>} : memref<72x256xf32, #tpu.memory_space<vmem>>, vector<4x256xf32>,
    %c0_i32_24 = arith.constant 0 : i32
    %61 = vector.broadcast %c0_i32_24 : i32 to vector<1x256xi32>
    %62 = arith.addi %0, %61 : vector<1x256xi32>
    %c0_i32_25 = arith.constant 0 : i32
    %63 = vector.broadcast %c0_i32_25 : i32 to vector<1x256xi32>
    %64 = arith.cmpi sge, %62, %63 : vector<1x256xi32>
    %c0_i32_26 = arith.constant 0 : i32
    %65 = vector.broadcast %c0_i32_26 : i32 to vector<1x256xi32>
    %66 = arith.addi %0, %65 : vector<1x256xi32>
    %c16_i32_27 = arith.constant 16 : i32
    %67 = vector.broadcast %c16_i32_27 : i32 to vector<1x256xi32>
    %68 = arith.cmpi slt, %66, %67 : vector<1x256xi32>
    %69 = arith.andi %64, %68 : vector<1x256xi1>
    %c-1_i32_28 = arith.constant -1 : i32
    %70 = vector.broadcast %c-1_i32_28 : i32 to vector<1x256xi32>
    %71 = arith.addi %1, %70 : vector<1x256xi32>
    %c0_i32_29 = arith.constant 0 : i32
    %72 = vector.broadcast %c0_i32_29 : i32 to vector<1x256xi32>
    %73 = arith.cmpi sge, %71, %72 : vector<1x256xi32>
    %c-1_i32_30 = arith.constant -1 : i32
    %74 = vector.broadcast %c-1_i32_30 : i32 to vector<1x256xi32>
    %75 = arith.addi %1, %74 : vector<1x256xi32>
    %c16_i32_31 = arith.constant 16 : i32
    %76 = vector.broadcast %c16_i32_31 : i32 to vector<1x256xi32>
    %77 = arith.cmpi slt, %75, %76 : vector<1x256xi32>
    %78 = arith.andi %73, %77 : vector<1x256xi1>
    %c1_i32_32 = arith.constant 1 : i32
    %79 = tpu.dynamic_rotate %3 by %c1_i32_32 dim 1 : vector<4x256xf32>, i32 -> vector<4x256xf32>
    %80 = arith.andi %69, %78 : vector<1x256xi1>
    %cst_33 = arith.constant 0.000000e+00 : f32
    %81 = vector.shape_cast %80 : vector<1x256xi1> to vector<1x256xi1>
    %82 = vector.broadcast %81 : vector<1x256xi1> to vector<4x256xi1>
    %83 = vector.broadcast %cst_33 : f32 to vector<4x256xf32>
    %84 = arith.select %82, %79, %83 : vector<4x256xi1>, vector<4x256xf32>
    %c12 = arith.constant 12 : index
    %c0_34 = arith.constant 0 : index
    %85 = vector.load %arg8[%c12, %c0_34] : memref<72x256xf32, #tpu.memory_space<vmem>>, vector<4x256xf32>
    tpu.vector_store %arg8[%c12, %c0_34], %84 {strides = array<i32>} : memref<72x256xf32, #tpu.memory_space<vmem>>, vector<4x256xf32>,
    %c0_i32_35 = arith.constant 0 : i32
    %86 = vector.broadcast %c0_i32_35 : i32 to vector<1x256xi32>
    %87 = arith.addi %1, %86 : vector<1x256xi32>
    %c0_i32_36 = arith.constant 0 : i32
    %88 = vector.broadcast %c0_i32_36 : i32 to vector<1x256xi32>
    %89 = arith.cmpi sge, %87, %88 : vector<1x256xi32>
    %c0_i32_37 = arith.constant 0 : i32
    %90 = vector.broadcast %c0_i32_37 : i32 to vector<1x256xi32>
    %91 = arith.addi %1, %90 : vector<1x256xi32>
    %c16_i32_38 = arith.constant 16 : i32
    %92 = vector.broadcast %c16_i32_38 : i32 to vector<1x256xi32>
    %93 = arith.cmpi slt, %91, %92 : vector<1x256xi32>
    %94 = arith.andi %89, %93 : vector<1x256xi1>
    %95 = arith.andi %69, %94 : vector<1x256xi1>
    %cst_39 = arith.constant 0.000000e+00 : f32
    %96 = vector.shape_cast %95 : vector<1x256xi1> to vector<1x256xi1>
    %97 = vector.broadcast %96 : vector<1x256xi1> to vector<4x256xi1>
    %98 = vector.broadcast %cst_39 : f32 to vector<4x256xf32>
    %99 = arith.select %97, %3, %98 : vector<4x256xi1>, vector<4x256xf32>
    %c16 = arith.constant 16 : index
    %c0_40 = arith.constant 0 : index
    %100 = vector.load %arg8[%c16, %c0_40] : memref<72x256xf32, #tpu.memory_space<vmem>>, vector<4x256xf32>
    tpu.vector_store %arg8[%c16, %c0_40], %99 {strides = array<i32>} : memref<72x256xf32, #tpu.memory_space<vmem>>, vector<4x256xf32>,
    %c1_i32_41 = arith.constant 1 : i32
    %101 = vector.broadcast %c1_i32_41 : i32 to vector<1x256xi32>
    %102 = arith.addi %1, %101 : vector<1x256xi32>
    %c0_i32_42 = arith.constant 0 : i32
    %103 = vector.broadcast %c0_i32_42 : i32 to vector<1x256xi32>
    %104 = arith.cmpi sge, %102, %103 : vector<1x256xi32>
    %c1_i32_43 = arith.constant 1 : i32
    %105 = vector.broadcast %c1_i32_43 : i32 to vector<1x256xi32>
    %106 = arith.addi %1, %105 : vector<1x256xi32>
    %c16_i32_44 = arith.constant 16 : i32
    %107 = vector.broadcast %c16_i32_44 : i32 to vector<1x256xi32>
    %108 = arith.cmpi slt, %106, %107 : vector<1x256xi32>
    %109 = arith.andi %104, %108 : vector<1x256xi1>
    %c255_i32 = arith.constant 255 : i32
    %110 = tpu.dynamic_rotate %3 by %c255_i32 dim 1 : vector<4x256xf32>, i32 -> vector<4x256xf32>
    %111 = arith.andi %69, %109 : vector<1x256xi1>
    %cst_45 = arith.constant 0.000000e+00 : f32
    %112 = vector.shape_cast %111 : vector<1x256xi1> to vector<1x256xi1>
    %113 = vector.broadcast %112 : vector<1x256xi1> to vector<4x256xi1>
    %114 = vector.broadcast %cst_45 : f32 to vector<4x256xf32>
    %115 = arith.select %113, %110, %114 : vector<4x256xi1>, vector<4x256xf32>
    %c20 = arith.constant 20 : index
    %c0_46 = arith.constant 0 : index
    %116 = vector.load %arg8[%c20, %c0_46] : memref<72x256xf32, #tpu.memory_space<vmem>>, vector<4x256xf32>
    tpu.vector_store %arg8[%c20, %c0_46], %115 {strides = array<i32>} : memref<72x256xf32, #tpu.memory_space<vmem>>, vector<4x256xf32>,
    %c1_i32_47 = arith.constant 1 : i32
    %117 = vector.broadcast %c1_i32_47 : i32 to vector<1x256xi32>
    %118 = arith.addi %0, %117 : vector<1x256xi32>
    %c0_i32_48 = arith.constant 0 : i32
    %119 = vector.broadcast %c0_i32_48 : i32 to vector<1x256xi32>
    %120 = arith.cmpi sge, %118, %119 : vector<1x256xi32>
    %c1_i32_49 = arith.constant 1 : i32
    %121 = vector.broadcast %c1_i32_49 : i32 to vector<1x256xi32>
    %122 = arith.addi %0, %121 : vector<1x256xi32>
    %c16_i32_50 = arith.constant 16 : i32
    %123 = vector.broadcast %c16_i32_50 : i32 to vector<1x256xi32>
    %124 = arith.cmpi slt, %122, %123 : vector<1x256xi32>
    %125 = arith.andi %120, %124 : vector<1x256xi1>
    %c-1_i32_51 = arith.constant -1 : i32
    %126 = vector.broadcast %c-1_i32_51 : i32 to vector<1x256xi32>
    %127 = arith.addi %1, %126 : vector<1x256xi32>
    %c0_i32_52 = arith.constant 0 : i32
    %128 = vector.broadcast %c0_i32_52 : i32 to vector<1x256xi32>
    %129 = arith.cmpi sge, %127, %128 : vector<1x256xi32>
    %c-1_i32_53 = arith.constant -1 : i32
    %130 = vector.broadcast %c-1_i32_53 : i32 to vector<1x256xi32>
    %131 = arith.addi %1, %130 : vector<1x256xi32>
    %c16_i32_54 = arith.constant 16 : i32
    %132 = vector.broadcast %c16_i32_54 : i32 to vector<1x256xi32>
    %133 = arith.cmpi slt, %131, %132 : vector<1x256xi32>
    %134 = arith.andi %129, %133 : vector<1x256xi1>
    %c241_i32 = arith.constant 241 : i32
    %135 = tpu.dynamic_rotate %3 by %c241_i32 dim 1 : vector<4x256xf32>, i32 -> vector<4x256xf32>
    %136 = arith.andi %125, %134 : vector<1x256xi1>
    %cst_55 = arith.constant 0.000000e+00 : f32
    %137 = vector.shape_cast %136 : vector<1x256xi1> to vector<1x256xi1>
    %138 = vector.broadcast %137 : vector<1x256xi1> to vector<4x256xi1>
    %139 = vector.broadcast %cst_55 : f32 to vector<4x256xf32>
    %140 = arith.select %138, %135, %139 : vector<4x256xi1>, vector<4x256xf32>
    %c24 = arith.constant 24 : index
    %c0_56 = arith.constant 0 : index
    %141 = vector.load %arg8[%c24, %c0_56] : memref<72x256xf32, #tpu.memory_space<vmem>>, vector<4x256xf32>
    tpu.vector_store %arg8[%c24, %c0_56], %140 {strides = array<i32>} : memref<72x256xf32, #tpu.memory_space<vmem>>, vector<4x256xf32>,
    %c0_i32_57 = arith.constant 0 : i32
    %142 = vector.broadcast %c0_i32_57 : i32 to vector<1x256xi32>
    %143 = arith.addi %1, %142 : vector<1x256xi32>
    %c0_i32_58 = arith.constant 0 : i32
    %144 = vector.broadcast %c0_i32_58 : i32 to vector<1x256xi32>
    %145 = arith.cmpi sge, %143, %144 : vector<1x256xi32>
    %c0_i32_59 = arith.constant 0 : i32
    %146 = vector.broadcast %c0_i32_59 : i32 to vector<1x256xi32>
    %147 = arith.addi %1, %146 : vector<1x256xi32>
    %c16_i32_60 = arith.constant 16 : i32
    %148 = vector.broadcast %c16_i32_60 : i32 to vector<1x256xi32>
    %149 = arith.cmpi slt, %147, %148 : vector<1x256xi32>
    %150 = arith.andi %145, %149 : vector<1x256xi1>
    %c240_i32 = arith.constant 240 : i32
    %151 = tpu.dynamic_rotate %3 by %c240_i32 dim 1 : vector<4x256xf32>, i32 -> vector<4x256xf32>
    %152 = arith.andi %125, %150 : vector<1x256xi1>
    %cst_61 = arith.constant 0.000000e+00 : f32
    %153 = vector.shape_cast %152 : vector<1x256xi1> to vector<1x256xi1>
    %154 = vector.broadcast %153 : vector<1x256xi1> to vector<4x256xi1>
    %155 = vector.broadcast %cst_61 : f32 to vector<4x256xf32>
    %156 = arith.select %154, %151, %155 : vector<4x256xi1>, vector<4x256xf32>
    %c28 = arith.constant 28 : index
    %c0_62 = arith.constant 0 : index
    %157 = vector.load %arg8[%c28, %c0_62] : memref<72x256xf32, #tpu.memory_space<vmem>>, vector<4x256xf32>
    tpu.vector_store %arg8[%c28, %c0_62], %156 {strides = array<i32>} : memref<72x256xf32, #tpu.memory_space<vmem>>, vector<4x256xf32>,
    %c1_i32_63 = arith.constant 1 : i32
    %158 = vector.broadcast %c1_i32_63 : i32 to vector<1x256xi32>
    %159 = arith.addi %1, %158 : vector<1x256xi32>
    %c0_i32_64 = arith.constant 0 : i32
    %160 = vector.broadcast %c0_i32_64 : i32 to vector<1x256xi32>
    %161 = arith.cmpi sge, %159, %160 : vector<1x256xi32>
    %c1_i32_65 = arith.constant 1 : i32
    %162 = vector.broadcast %c1_i32_65 : i32 to vector<1x256xi32>
    %163 = arith.addi %1, %162 : vector<1x256xi32>
    %c16_i32_66 = arith.constant 16 : i32
    %164 = vector.broadcast %c16_i32_66 : i32 to vector<1x256xi32>
    %165 = arith.cmpi slt, %163, %164 : vector<1x256xi32>
    %166 = arith.andi %161, %165 : vector<1x256xi1>
    %c239_i32 = arith.constant 239 : i32
    %167 = tpu.dynamic_rotate %3 by %c239_i32 dim 1 : vector<4x256xf32>, i32 -> vector<4x256xf32>
    %168 = arith.andi %125, %166 : vector<1x256xi1>
    %cst_67 = arith.constant 0.000000e+00 : f32
    %169 = vector.shape_cast %168 : vector<1x256xi1> to vector<1x256xi1>
    %170 = vector.broadcast %169 : vector<1x256xi1> to vector<4x256xi1>
    %171 = vector.broadcast %cst_67 : f32 to vector<4x256xf32>
    %172 = arith.select %170, %167, %171 : vector<4x256xi1>, vector<4x256xf32>
    %c32 = arith.constant 32 : index
    %c0_68 = arith.constant 0 : index
    %173 = vector.load %arg8[%c32, %c0_68] : memref<72x256xf32, #tpu.memory_space<vmem>>, vector<4x256xf32>
    tpu.vector_store %arg8[%c32, %c0_68], %172 {strides = array<i32>} : memref<72x256xf32, #tpu.memory_space<vmem>>, vector<4x256xf32>,
    %c0_69 = arith.constant 0 : index
    %c0_70 = arith.constant 0 : index
    %174 = vector.load %arg8[%c0_69, %c0_70] : memref<72x256xf32, #tpu.memory_space<vmem>>, vector<36x256xf32>
    %c0_71 = arith.constant 0 : index
    %c0_72 = arith.constant 0 : index
    %175 = vector.load %arg3[%c0_71, %c0_72] : memref<8x36xf32, #tpu.memory_space<vmem>>, vector<8x36xf32>
    %cst_73 = arith.constant dense<0.000000e+00> : vector<8x256xf32>
    %176 = tpu.matmul %175, %174, %cst_73 {dimension_numbers = #tpu.dot_dimension_numbers<[1], [0], [0], [1], [0, 0, 1, 1], [], []>} : vector<8x36xf32>, vector<36x256xf32>, vector<8x256xf32> -> vector<8x256xf32>
    %c0_74 = arith.constant 0 : index
    %c0_75 = arith.constant 0 : index
    %177 = vector.load %arg4[%c0_74, %c0_75] : memref<8x1xf32, #tpu.memory_space<vmem>>, vector<8x1xf32>
    %178 = vector.broadcast %177 : vector<8x1xf32> to vector<8x256xf32>
    %179 = arith.addf %176, %178 : vector<8x256xf32>
    %cst_76 = arith.constant 0.000000e+00 : f32
    %180 = vector.broadcast %cst_76 : f32 to vector<8x256xf32>
    %181 = arith.maximumf %179, %180 : vector<8x256xf32>
    %c255_i32_77 = arith.constant 255 : i32
    %182 = tpu.dynamic_rotate %181 by %c255_i32_77 dim 1 : vector<8x256xf32>, i32 -> vector<8x256xf32>
    %183 = arith.maximumf %181, %182 : vector<8x256xf32>
    %c240_i32_78 = arith.constant 240 : i32
    %184 = tpu.dynamic_rotate %181 by %c240_i32_78 dim 1 : vector<8x256xf32>, i32 -> vector<8x256xf32>
    %185 = arith.maximumf %183, %184 : vector<8x256xf32>
    %c239_i32_79 = arith.constant 239 : i32
    %186 = tpu.dynamic_rotate %181 by %c239_i32_79 dim 1 : vector<8x256xf32>, i32 -> vector<8x256xf32>
    %187 = arith.maximumf %185, %186 : vector<8x256xf32>
    %c-2_i32 = arith.constant -2 : i32
    %188 = vector.broadcast %c-2_i32 : i32 to vector<1x256xi32>
    %189 = arith.addi %0, %188 : vector<1x256xi32>
    %c0_i32_80 = arith.constant 0 : i32
    %190 = vector.broadcast %c0_i32_80 : i32 to vector<1x256xi32>
    %191 = arith.cmpi sge, %189, %190 : vector<1x256xi32>
    %c-2_i32_81 = arith.constant -2 : i32
    %192 = vector.broadcast %c-2_i32_81 : i32 to vector<1x256xi32>
    %193 = arith.addi %0, %192 : vector<1x256xi32>
    %c16_i32_82 = arith.constant 16 : i32
    %194 = vector.broadcast %c16_i32_82 : i32 to vector<1x256xi32>
    %195 = arith.cmpi slt, %193, %194 : vector<1x256xi32>
    %196 = arith.andi %191, %195 : vector<1x256xi1>
    %c-2_i32_83 = arith.constant -2 : i32
    %197 = vector.broadcast %c-2_i32_83 : i32 to vector<1x256xi32>
    %198 = arith.addi %1, %197 : vector<1x256xi32>
    %c0_i32_84 = arith.constant 0 : i32
    %199 = vector.broadcast %c0_i32_84 : i32 to vector<1x256xi32>
    %200 = arith.cmpi sge, %198, %199 : vector<1x256xi32>
    %c-2_i32_85 = arith.constant -2 : i32
    %201 = vector.broadcast %c-2_i32_85 : i32 to vector<1x256xi32>
    %202 = arith.addi %1, %201 : vector<1x256xi32>
    %c16_i32_86 = arith.constant 16 : i32
    %203 = vector.broadcast %c16_i32_86 : i32 to vector<1x256xi32>
    %204 = arith.cmpi slt, %202, %203 : vector<1x256xi32>
    %205 = arith.andi %200, %204 : vector<1x256xi1>
    %c34_i32 = arith.constant 34 : i32
    %206 = tpu.dynamic_rotate %187 by %c34_i32 dim 1 : vector<8x256xf32>, i32 -> vector<8x256xf32>
    %207 = arith.andi %196, %205 : vector<1x256xi1>
    %cst_87 = arith.constant 0.000000e+00 : f32
    %208 = vector.shape_cast %207 : vector<1x256xi1> to vector<1x256xi1>
    %209 = vector.broadcast %208 : vector<1x256xi1> to vector<8x256xi1>
    %210 = vector.broadcast %cst_87 : f32 to vector<8x256xf32>
    %211 = arith.select %209, %206, %210 : vector<8x256xi1>, vector<8x256xf32>
    %c0_88 = arith.constant 0 : index
    %c0_89 = arith.constant 0 : index
    %212 = vector.load %arg8[%c0_88, %c0_89] : memref<72x256xf32, #tpu.memory_space<vmem>>, vector<8x256xf32>
    tpu.vector_store %arg8[%c0_88, %c0_89], %211 {strides = array<i32>} : memref<72x256xf32, #tpu.memory_space<vmem>>, vector<8x256xf32>,
    %c0_i32_90 = arith.constant 0 : i32
    %213 = vector.broadcast %c0_i32_90 : i32 to vector<1x256xi32>
    %214 = arith.addi %1, %213 : vector<1x256xi32>
    %c0_i32_91 = arith.constant 0 : i32
    %215 = vector.broadcast %c0_i32_91 : i32 to vector<1x256xi32>
    %216 = arith.cmpi sge, %214, %215 : vector<1x256xi32>
    %c0_i32_92 = arith.constant 0 : i32
    %217 = vector.broadcast %c0_i32_92 : i32 to vector<1x256xi32>
    %218 = arith.addi %1, %217 : vector<1x256xi32>
    %c16_i32_93 = arith.constant 16 : i32
    %219 = vector.broadcast %c16_i32_93 : i32 to vector<1x256xi32>
    %220 = arith.cmpi slt, %218, %219 : vector<1x256xi32>
    %221 = arith.andi %216, %220 : vector<1x256xi1>
    %c32_i32 = arith.constant 32 : i32
    %222 = tpu.dynamic_rotate %187 by %c32_i32 dim 1 : vector<8x256xf32>, i32 -> vector<8x256xf32>
    %223 = arith.andi %196, %221 : vector<1x256xi1>
    %cst_94 = arith.constant 0.000000e+00 : f32
    %224 = vector.shape_cast %223 : vector<1x256xi1> to vector<1x256xi1>
    %225 = vector.broadcast %224 : vector<1x256xi1> to vector<8x256xi1>
    %226 = vector.broadcast %cst_94 : f32 to vector<8x256xf32>
    %227 = arith.select %225, %222, %226 : vector<8x256xi1>, vector<8x256xf32>
    %c8_95 = arith.constant 8 : index
    %c0_96 = arith.constant 0 : index
    %228 = vector.load %arg8[%c8_95, %c0_96] : memref<72x256xf32, #tpu.memory_space<vmem>>, vector<8x256xf32>
    tpu.vector_store %arg8[%c8_95, %c0_96], %227 {strides = array<i32>} : memref<72x256xf32, #tpu.memory_space<vmem>>, vector<8x256xf32>,
    %c2_i32 = arith.constant 2 : i32
    %229 = vector.broadcast %c2_i32 : i32 to vector<1x256xi32>
    %230 = arith.addi %1, %229 : vector<1x256xi32>
    %c0_i32_97 = arith.constant 0 : i32
    %231 = vector.broadcast %c0_i32_97 : i32 to vector<1x256xi32>
    %232 = arith.cmpi sge, %230, %231 : vector<1x256xi32>
    %c2_i32_98 = arith.constant 2 : i32
    %233 = vector.broadcast %c2_i32_98 : i32 to vector<1x256xi32>
    %234 = arith.addi %1, %233 : vector<1x256xi32>
    %c16_i32_99 = arith.constant 16 : i32
    %235 = vector.broadcast %c16_i32_99 : i32 to vector<1x256xi32>
    %236 = arith.cmpi slt, %234, %235 : vector<1x256xi32>
    %237 = arith.andi %232, %236 : vector<1x256xi1>
    %c30_i32 = arith.constant 30 : i32
    %238 = tpu.dynamic_rotate %187 by %c30_i32 dim 1 : vector<8x256xf32>, i32 -> vector<8x256xf32>
    %239 = arith.andi %196, %237 : vector<1x256xi1>
    %cst_100 = arith.constant 0.000000e+00 : f32
    %240 = vector.shape_cast %239 : vector<1x256xi1> to vector<1x256xi1>
    %241 = vector.broadcast %240 : vector<1x256xi1> to vector<8x256xi1>
    %242 = vector.broadcast %cst_100 : f32 to vector<8x256xf32>
    %243 = arith.select %241, %238, %242 : vector<8x256xi1>, vector<8x256xf32>
    %c16_101 = arith.constant 16 : index
    %c0_102 = arith.constant 0 : index
    %244 = vector.load %arg8[%c16_101, %c0_102] : memref<72x256xf32, #tpu.memory_space<vmem>>, vector<8x256xf32>
    tpu.vector_store %arg8[%c16_101, %c0_102], %243 {strides = array<i32>} : memref<72x256xf32, #tpu.memory_space<vmem>>, vector<8x256xf32>,
    %c0_i32_103 = arith.constant 0 : i32
    %245 = vector.broadcast %c0_i32_103 : i32 to vector<1x256xi32>
    %246 = arith.addi %0, %245 : vector<1x256xi32>
    %c0_i32_104 = arith.constant 0 : i32
    %247 = vector.broadcast %c0_i32_104 : i32 to vector<1x256xi32>
    %248 = arith.cmpi sge, %246, %247 : vector<1x256xi32>
    %c0_i32_105 = arith.constant 0 : i32
    %249 = vector.broadcast %c0_i32_105 : i32 to vector<1x256xi32>
    %250 = arith.addi %0, %249 : vector<1x256xi32>
    %c16_i32_106 = arith.constant 16 : i32
    %251 = vector.broadcast %c16_i32_106 : i32 to vector<1x256xi32>
    %252 = arith.cmpi slt, %250, %251 : vector<1x256xi32>
    %253 = arith.andi %248, %252 : vector<1x256xi1>
    %c-2_i32_107 = arith.constant -2 : i32
    %254 = vector.broadcast %c-2_i32_107 : i32 to vector<1x256xi32>
    %255 = arith.addi %1, %254 : vector<1x256xi32>
    %c0_i32_108 = arith.constant 0 : i32
    %256 = vector.broadcast %c0_i32_108 : i32 to vector<1x256xi32>
    %257 = arith.cmpi sge, %255, %256 : vector<1x256xi32>
    %c-2_i32_109 = arith.constant -2 : i32
    %258 = vector.broadcast %c-2_i32_109 : i32 to vector<1x256xi32>
    %259 = arith.addi %1, %258 : vector<1x256xi32>
    %c16_i32_110 = arith.constant 16 : i32
    %260 = vector.broadcast %c16_i32_110 : i32 to vector<1x256xi32>
    %261 = arith.cmpi slt, %259, %260 : vector<1x256xi32>
    %262 = arith.andi %257, %261 : vector<1x256xi1>
    %c2_i32_111 = arith.constant 2 : i32
    %263 = tpu.dynamic_rotate %187 by %c2_i32_111 dim 1 : vector<8x256xf32>, i32 -> vector<8x256xf32>
    %264 = arith.andi %253, %262 : vector<1x256xi1>
    %cst_112 = arith.constant 0.000000e+00 : f32
    %265 = vector.shape_cast %264 : vector<1x256xi1> to vector<1x256xi1>
    %266 = vector.broadcast %265 : vector<1x256xi1> to vector<8x256xi1>
    %267 = vector.broadcast %cst_112 : f32 to vector<8x256xf32>
    %268 = arith.select %266, %263, %267 : vector<8x256xi1>, vector<8x256xf32>
    %c24_113 = arith.constant 24 : index
    %c0_114 = arith.constant 0 : index
    %269 = vector.load %arg8[%c24_113, %c0_114] : memref<72x256xf32, #tpu.memory_space<vmem>>, vector<8x256xf32>
    tpu.vector_store %arg8[%c24_113, %c0_114], %268 {strides = array<i32>} : memref<72x256xf32, #tpu.memory_space<vmem>>, vector<8x256xf32>,
    %c0_i32_115 = arith.constant 0 : i32
    %270 = vector.broadcast %c0_i32_115 : i32 to vector<1x256xi32>
    %271 = arith.addi %1, %270 : vector<1x256xi32>
    %c0_i32_116 = arith.constant 0 : i32
    %272 = vector.broadcast %c0_i32_116 : i32 to vector<1x256xi32>
    %273 = arith.cmpi sge, %271, %272 : vector<1x256xi32>
    %c0_i32_117 = arith.constant 0 : i32
    %274 = vector.broadcast %c0_i32_117 : i32 to vector<1x256xi32>
    %275 = arith.addi %1, %274 : vector<1x256xi32>
    %c16_i32_118 = arith.constant 16 : i32
    %276 = vector.broadcast %c16_i32_118 : i32 to vector<1x256xi32>
    %277 = arith.cmpi slt, %275, %276 : vector<1x256xi32>
    %278 = arith.andi %273, %277 : vector<1x256xi1>
    %279 = arith.andi %253, %278 : vector<1x256xi1>
    %cst_119 = arith.constant 0.000000e+00 : f32
    %280 = vector.shape_cast %279 : vector<1x256xi1> to vector<1x256xi1>
    %281 = vector.broadcast %280 : vector<1x256xi1> to vector<8x256xi1>
    %282 = vector.broadcast %cst_119 : f32 to vector<8x256xf32>
    %283 = arith.select %281, %187, %282 : vector<8x256xi1>, vector<8x256xf32>
    %c32_120 = arith.constant 32 : index
    %c0_121 = arith.constant 0 : index
    %284 = vector.load %arg8[%c32_120, %c0_121] : memref<72x256xf32, #tpu.memory_space<vmem>>, vector<8x256xf32>
    tpu.vector_store %arg8[%c32_120, %c0_121], %283 {strides = array<i32>} : memref<72x256xf32, #tpu.memory_space<vmem>>, vector<8x256xf32>,
    %c2_i32_122 = arith.constant 2 : i32
    %285 = vector.broadcast %c2_i32_122 : i32 to vector<1x256xi32>
    %286 = arith.addi %1, %285 : vector<1x256xi32>
    %c0_i32_123 = arith.constant 0 : i32
    %287 = vector.broadcast %c0_i32_123 : i32 to vector<1x256xi32>
    %288 = arith.cmpi sge, %286, %287 : vector<1x256xi32>
    %c2_i32_124 = arith.constant 2 : i32
    %289 = vector.broadcast %c2_i32_124 : i32 to vector<1x256xi32>
    %290 = arith.addi %1, %289 : vector<1x256xi32>
    %c16_i32_125 = arith.constant 16 : i32
    %291 = vector.broadcast %c16_i32_125 : i32 to vector<1x256xi32>
    %292 = arith.cmpi slt, %290, %291 : vector<1x256xi32>
    %293 = arith.andi %288, %292 : vector<1x256xi1>
    %c254_i32 = arith.constant 254 : i32
    %294 = tpu.dynamic_rotate %187 by %c254_i32 dim 1 : vector<8x256xf32>, i32 -> vector<8x256xf32>
    %295 = arith.andi %253, %293 : vector<1x256xi1>
    %cst_126 = arith.constant 0.000000e+00 : f32
    %296 = vector.shape_cast %295 : vector<1x256xi1> to vector<1x256xi1>
    %297 = vector.broadcast %296 : vector<1x256xi1> to vector<8x256xi1>
    %298 = vector.broadcast %cst_126 : f32 to vector<8x256xf32>
    %299 = arith.select %297, %294, %298 : vector<8x256xi1>, vector<8x256xf32>
    %c40 = arith.constant 40 : index
    %c0_127 = arith.constant 0 : index
    %300 = vector.load %arg8[%c40, %c0_127] : memref<72x256xf32, #tpu.memory_space<vmem>>, vector<8x256xf32>
    tpu.vector_store %arg8[%c40, %c0_127], %299 {strides = array<i32>} : memref<72x256xf32, #tpu.memory_space<vmem>>, vector<8x256xf32>,
    %c2_i32_128 = arith.constant 2 : i32
    %301 = vector.broadcast %c2_i32_128 : i32 to vector<1x256xi32>
    %302 = arith.addi %0, %301 : vector<1x256xi32>
    %c0_i32_129 = arith.constant 0 : i32
    %303 = vector.broadcast %c0_i32_129 : i32 to vector<1x256xi32>
    %304 = arith.cmpi sge, %302, %303 : vector<1x256xi32>
    %c2_i32_130 = arith.constant 2 : i32
    %305 = vector.broadcast %c2_i32_130 : i32 to vector<1x256xi32>
    %306 = arith.addi %0, %305 : vector<1x256xi32>
    %c16_i32_131 = arith.constant 16 : i32
    %307 = vector.broadcast %c16_i32_131 : i32 to vector<1x256xi32>
    %308 = arith.cmpi slt, %306, %307 : vector<1x256xi32>
    %309 = arith.andi %304, %308 : vector<1x256xi1>
    %c-2_i32_132 = arith.constant -2 : i32
    %310 = vector.broadcast %c-2_i32_132 : i32 to vector<1x256xi32>
    %311 = arith.addi %1, %310 : vector<1x256xi32>
    %c0_i32_133 = arith.constant 0 : i32
    %312 = vector.broadcast %c0_i32_133 : i32 to vector<1x256xi32>
    %313 = arith.cmpi sge, %311, %312 : vector<1x256xi32>
    %c-2_i32_134 = arith.constant -2 : i32
    %314 = vector.broadcast %c-2_i32_134 : i32 to vector<1x256xi32>
    %315 = arith.addi %1, %314 : vector<1x256xi32>
    %c16_i32_135 = arith.constant 16 : i32
    %316 = vector.broadcast %c16_i32_135 : i32 to vector<1x256xi32>
    %317 = arith.cmpi slt, %315, %316 : vector<1x256xi32>
    %318 = arith.andi %313, %317 : vector<1x256xi1>
    %c226_i32 = arith.constant 226 : i32
    %319 = tpu.dynamic_rotate %187 by %c226_i32 dim 1 : vector<8x256xf32>, i32 -> vector<8x256xf32>
    %320 = arith.andi %309, %318 : vector<1x256xi1>
    %cst_136 = arith.constant 0.000000e+00 : f32
    %321 = vector.shape_cast %320 : vector<1x256xi1> to vector<1x256xi1>
    %322 = vector.broadcast %321 : vector<1x256xi1> to vector<8x256xi1>
    %323 = vector.broadcast %cst_136 : f32 to vector<8x256xf32>
    %324 = arith.select %322, %319, %323 : vector<8x256xi1>, vector<8x256xf32>
    %c48 = arith.constant 48 : index
    %c0_137 = arith.constant 0 : index
    %325 = vector.load %arg8[%c48, %c0_137] : memref<72x256xf32, #tpu.memory_space<vmem>>, vector<8x256xf32>
    tpu.vector_store %arg8[%c48, %c0_137], %324 {strides = array<i32>} : memref<72x256xf32, #tpu.memory_space<vmem>>, vector<8x256xf32>,
    %c0_i32_138 = arith.constant 0 : i32
    %326 = vector.broadcast %c0_i32_138 : i32 to vector<1x256xi32>
    %327 = arith.addi %1, %326 : vector<1x256xi32>
    %c0_i32_139 = arith.constant 0 : i32
    %328 = vector.broadcast %c0_i32_139 : i32 to vector<1x256xi32>
    %329 = arith.cmpi sge, %327, %328 : vector<1x256xi32>
    %c0_i32_140 = arith.constant 0 : i32
    %330 = vector.broadcast %c0_i32_140 : i32 to vector<1x256xi32>
    %331 = arith.addi %1, %330 : vector<1x256xi32>
    %c16_i32_141 = arith.constant 16 : i32
    %332 = vector.broadcast %c16_i32_141 : i32 to vector<1x256xi32>
    %333 = arith.cmpi slt, %331, %332 : vector<1x256xi32>
    %334 = arith.andi %329, %333 : vector<1x256xi1>
    %c224_i32 = arith.constant 224 : i32
    %335 = tpu.dynamic_rotate %187 by %c224_i32 dim 1 : vector<8x256xf32>, i32 -> vector<8x256xf32>
    %336 = arith.andi %309, %334 : vector<1x256xi1>
    %cst_142 = arith.constant 0.000000e+00 : f32
    %337 = vector.shape_cast %336 : vector<1x256xi1> to vector<1x256xi1>
    %338 = vector.broadcast %337 : vector<1x256xi1> to vector<8x256xi1>
    %339 = vector.broadcast %cst_142 : f32 to vector<8x256xf32>
    %340 = arith.select %338, %335, %339 : vector<8x256xi1>, vector<8x256xf32>
    %c56 = arith.constant 56 : index
    %c0_143 = arith.constant 0 : index
    %341 = vector.load %arg8[%c56, %c0_143] : memref<72x256xf32, #tpu.memory_space<vmem>>, vector<8x256xf32>
    tpu.vector_store %arg8[%c56, %c0_143], %340 {strides = array<i32>} : memref<72x256xf32, #tpu.memory_space<vmem>>, vector<8x256xf32>,
    %c2_i32_144 = arith.constant 2 : i32
    %342 = vector.broadcast %c2_i32_144 : i32 to vector<1x256xi32>
    %343 = arith.addi %1, %342 : vector<1x256xi32>
    %c0_i32_145 = arith.constant 0 : i32
    %344 = vector.broadcast %c0_i32_145 : i32 to vector<1x256xi32>
    %345 = arith.cmpi sge, %343, %344 : vector<1x256xi32>
    %c2_i32_146 = arith.constant 2 : i32
    %346 = vector.broadcast %c2_i32_146 : i32 to vector<1x256xi32>
    %347 = arith.addi %1, %346 : vector<1x256xi32>
    %c16_i32_147 = arith.constant 16 : i32
    %348 = vector.broadcast %c16_i32_147 : i32 to vector<1x256xi32>
    %349 = arith.cmpi slt, %347, %348 : vector<1x256xi32>
    %350 = arith.andi %345, %349 : vector<1x256xi1>
    %c222_i32 = arith.constant 222 : i32
    %351 = tpu.dynamic_rotate %187 by %c222_i32 dim 1 : vector<8x256xf32>, i32 -> vector<8x256xf32>
    %352 = arith.andi %309, %350 : vector<1x256xi1>
    %cst_148 = arith.constant 0.000000e+00 : f32
    %353 = vector.shape_cast %352 : vector<1x256xi1> to vector<1x256xi1>
    %354 = vector.broadcast %353 : vector<1x256xi1> to vector<8x256xi1>
    %355 = vector.broadcast %cst_148 : f32 to vector<8x256xf32>
    %356 = arith.select %354, %351, %355 : vector<8x256xi1>, vector<8x256xf32>
    %c64 = arith.constant 64 : index
    %c0_149 = arith.constant 0 : index
    %357 = vector.load %arg8[%c64, %c0_149] : memref<72x256xf32, #tpu.memory_space<vmem>>, vector<8x256xf32>
    tpu.vector_store %arg8[%c64, %c0_149], %356 {strides = array<i32>} : memref<72x256xf32, #tpu.memory_space<vmem>>, vector<8x256xf32>,
    %c0_150 = arith.constant 0 : index
    %c0_151 = arith.constant 0 : index
    %358 = vector.load %arg8[%c0_150, %c0_151] : memref<72x256xf32, #tpu.memory_space<vmem>>, vector<72x256xf32>
    %c0_152 = arith.constant 0 : index
    %c0_153 = arith.constant 0 : index
    %359 = vector.load %arg5[%c0_152, %c0_153] : memref<16x72xf32, #tpu.memory_space<vmem>>, vector<16x72xf32>
    %cst_154 = arith.constant dense<0.000000e+00> : vector<16x256xf32>
    %360 = tpu.matmul %359, %358, %cst_154 {dimension_numbers = #tpu.dot_dimension_numbers<[1], [0], [0], [1], [0, 0, 1, 1], [], []>} : vector<16x72xf32>, vector<72x256xf32>, vector<16x256xf32> -> vector<16x256xf32>
    %c0_155 = arith.constant 0 : index
    %c0_156 = arith.constant 0 : index
    %361 = vector.load %arg6[%c0_155, %c0_156] : memref<16x1xf32, #tpu.memory_space<vmem>>, vector<16x1xf32>
    %362 = vector.broadcast %361 : vector<16x1xf32> to vector<16x256xf32>
    %363 = arith.addf %360, %362 : vector<16x256xf32>
    %cst_157 = arith.constant 0.000000e+00 : f32
    %364 = vector.broadcast %cst_157 : f32 to vector<16x256xf32>
    %365 = arith.maximumf %363, %364 : vector<16x256xf32>
    %c254_i32_158 = arith.constant 254 : i32
    %366 = tpu.dynamic_rotate %365 by %c254_i32_158 dim 1 : vector<16x256xf32>, i32 -> vector<16x256xf32>
    %367 = arith.maximumf %365, %366 : vector<16x256xf32>
    %c224_i32_159 = arith.constant 224 : i32
    %368 = tpu.dynamic_rotate %365 by %c224_i32_159 dim 1 : vector<16x256xf32>, i32 -> vector<16x256xf32>
    %369 = arith.maximumf %367, %368 : vector<16x256xf32>
    %c222_i32_160 = arith.constant 222 : i32
    %370 = tpu.dynamic_rotate %365 by %c222_i32_160 dim 1 : vector<16x256xf32>, i32 -> vector<16x256xf32>
    %371 = arith.maximumf %369, %370 : vector<16x256xf32>
    %372 = tpu.iota {dimensions = array<i32: 1>} : vector<1x256xi32>
    %cst_161 = arith.constant 0.000000e+00 : f32
    %373 = vector.broadcast %cst_161 : f32 to vector<16x256xf32>
    %c252_i32 = arith.constant 252 : i32
    %374 = tpu.dynamic_rotate %371 by %c252_i32 dim 1 : vector<16x256xf32>, i32 -> vector<16x256xf32>
    %375 = arith.maximumf %371, %374 : vector<16x256xf32>
    %c192_i32 = arith.constant 192 : i32
    %376 = tpu.dynamic_rotate %371 by %c192_i32 dim 1 : vector<16x256xf32>, i32 -> vector<16x256xf32>
    %377 = arith.maximumf %375, %376 : vector<16x256xf32>
    %c188_i32 = arith.constant 188 : i32
    %378 = tpu.dynamic_rotate %371 by %c188_i32 dim 1 : vector<16x256xf32>, i32 -> vector<16x256xf32>
    %379 = arith.maximumf %377, %378 : vector<16x256xf32>
    %c0_i32_162 = arith.constant 0 : i32
    %380 = vector.broadcast %c0_i32_162 : i32 to vector<1x256xi32>
    %381 = arith.cmpi eq, %372, %380 : vector<1x256xi32>
    %382 = vector.shape_cast %381 : vector<1x256xi1> to vector<1x256xi1>
    %383 = vector.broadcast %382 : vector<1x256xi1> to vector<16x256xi1>
    %384 = arith.select %383, %379, %373 : vector<16x256xi1>, vector<16x256xf32>
    %c253_i32 = arith.constant 253 : i32
    %385 = tpu.dynamic_rotate %379 by %c253_i32 dim 1 : vector<16x256xf32>, i32 -> vector<16x256xf32>
    %c1_i32_163 = arith.constant 1 : i32
    %386 = vector.broadcast %c1_i32_163 : i32 to vector<1x256xi32>
    %387 = arith.cmpi eq, %372, %386 : vector<1x256xi32>
    %388 = vector.shape_cast %387 : vector<1x256xi1> to vector<1x256xi1>
    %389 = vector.broadcast %388 : vector<1x256xi1> to vector<16x256xi1>
    %390 = arith.select %389, %385, %384 : vector<16x256xi1>, vector<16x256xf32>
    %c250_i32 = arith.constant 250 : i32
    %391 = tpu.dynamic_rotate %379 by %c250_i32 dim 1 : vector<16x256xf32>, i32 -> vector<16x256xf32>
    %c2_i32_164 = arith.constant 2 : i32
    %392 = vector.broadcast %c2_i32_164 : i32 to vector<1x256xi32>
    %393 = arith.cmpi eq, %372, %392 : vector<1x256xi32>
    %394 = vector.shape_cast %393 : vector<1x256xi1> to vector<1x256xi1>
    %395 = vector.broadcast %394 : vector<1x256xi1> to vector<16x256xi1>
    %396 = arith.select %395, %391, %390 : vector<16x256xi1>, vector<16x256xf32>
    %c195_i32 = arith.constant 195 : i32
    %397 = tpu.dynamic_rotate %379 by %c195_i32 dim 1 : vector<16x256xf32>, i32 -> vector<16x256xf32>
    %c3_i32 = arith.constant 3 : i32
    %398 = vector.broadcast %c3_i32 : i32 to vector<1x256xi32>
    %399 = arith.cmpi eq, %372, %398 : vector<1x256xi32>
    %400 = vector.shape_cast %399 : vector<1x256xi1> to vector<1x256xi1>
    %401 = vector.broadcast %400 : vector<1x256xi1> to vector<16x256xi1>
    %402 = arith.select %401, %397, %396 : vector<16x256xi1>, vector<16x256xf32>
    %c192_i32_165 = arith.constant 192 : i32
    %403 = tpu.dynamic_rotate %379 by %c192_i32_165 dim 1 : vector<16x256xf32>, i32 -> vector<16x256xf32>
    %c4_i32 = arith.constant 4 : i32
    %404 = vector.broadcast %c4_i32 : i32 to vector<1x256xi32>
    %405 = arith.cmpi eq, %372, %404 : vector<1x256xi32>
    %406 = vector.shape_cast %405 : vector<1x256xi1> to vector<1x256xi1>
    %407 = vector.broadcast %406 : vector<1x256xi1> to vector<16x256xi1>
    %408 = arith.select %407, %403, %402 : vector<16x256xi1>, vector<16x256xf32>
    %c189_i32 = arith.constant 189 : i32
    %409 = tpu.dynamic_rotate %379 by %c189_i32 dim 1 : vector<16x256xf32>, i32 -> vector<16x256xf32>
    %c5_i32 = arith.constant 5 : i32
    %410 = vector.broadcast %c5_i32 : i32 to vector<1x256xi32>
    %411 = arith.cmpi eq, %372, %410 : vector<1x256xi32>
    %412 = vector.shape_cast %411 : vector<1x256xi1> to vector<1x256xi1>
    %413 = vector.broadcast %412 : vector<1x256xi1> to vector<16x256xi1>
    %414 = arith.select %413, %409, %408 : vector<16x256xi1>, vector<16x256xf32>
    %c134_i32 = arith.constant 134 : i32
    %415 = tpu.dynamic_rotate %379 by %c134_i32 dim 1 : vector<16x256xf32>, i32 -> vector<16x256xf32>
    %c6_i32 = arith.constant 6 : i32
    %416 = vector.broadcast %c6_i32 : i32 to vector<1x256xi32>
    %417 = arith.cmpi eq, %372, %416 : vector<1x256xi32>
    %418 = vector.shape_cast %417 : vector<1x256xi1> to vector<1x256xi1>
    %419 = vector.broadcast %418 : vector<1x256xi1> to vector<16x256xi1>
    %420 = arith.select %419, %415, %414 : vector<16x256xi1>, vector<16x256xf32>
    %c131_i32 = arith.constant 131 : i32
    %421 = tpu.dynamic_rotate %379 by %c131_i32 dim 1 : vector<16x256xf32>, i32 -> vector<16x256xf32>
    %c7_i32 = arith.constant 7 : i32
    %422 = vector.broadcast %c7_i32 : i32 to vector<1x256xi32>
    %423 = arith.cmpi eq, %372, %422 : vector<1x256xi32>
    %424 = vector.shape_cast %423 : vector<1x256xi1> to vector<1x256xi1>
    %425 = vector.broadcast %424 : vector<1x256xi1> to vector<16x256xi1>
    %426 = arith.select %425, %421, %420 : vector<16x256xi1>, vector<16x256xf32>
    %c128_i32 = arith.constant 128 : i32
    %427 = tpu.dynamic_rotate %379 by %c128_i32 dim 1 : vector<16x256xf32>, i32 -> vector<16x256xf32>
    %c8_i32 = arith.constant 8 : i32
    %428 = vector.broadcast %c8_i32 : i32 to vector<1x256xi32>
    %429 = arith.cmpi eq, %372, %428 : vector<1x256xi32>
    %430 = vector.shape_cast %429 : vector<1x256xi1> to vector<1x256xi1>
    %431 = vector.broadcast %430 : vector<1x256xi1> to vector<16x256xi1>
    %432 = arith.select %431, %427, %426 : vector<16x256xi1>, vector<16x256xf32>
    %433 = vector.extract_strided_slice %432 {offsets = [0, 0], sizes = [16, 9], strides = [1, 1]} : vector<16x256xf32> to vector<16x9xf32>
    %c0_166 = arith.constant 0 : index
    %c0_167 = arith.constant 0 : index
    %c0_168 = arith.constant 0 : index
    %434 = vector.load %arg7[%c0_166, %c0_167, %c0_168] : memref<1x16x9xf32, #tpu.memory_space<vmem>>, vector<1x16x9xf32>
    %435 = vector.shape_cast %434 : vector<1x16x9xf32> to vector<16x9xf32>
    %436 = vector.shape_cast %433 : vector<16x9xf32> to vector<1x16x9xf32>
    tpu.vector_store %arg7[%c0_166, %c0_167, %c0_168], %436 {strides = array<i32>} : memref<1x16x9xf32, #tpu.memory_space<vmem>>, vector<1x16x9xf32>,
    return
  }
  func.func @transform_0(%arg0: i32) -> (i32, i32, i32) {
    %c0_i32 = arith.constant 0 : i32
    %c0_i32_0 = arith.constant 0 : i32
    %c0_i32_1 = arith.constant 0 : i32
    return %arg0, %c0_i32, %c0_i32_0 : i32, i32, i32
  }
  func.func @transform_1(%arg0: i32) -> (i32, i32) {
    %c0_i32 = arith.constant 0 : i32
    %c0_i32_0 = arith.constant 0 : i32
    %c0_i32_1 = arith.constant 0 : i32
    return %c0_i32, %c0_i32_0 : i32, i32
  }
  func.func @transform_2(%arg0: i32) -> (i32, i32) {
    %c0_i32 = arith.constant 0 : i32
    %c0_i32_0 = arith.constant 0 : i32
    %c0_i32_1 = arith.constant 0 : i32
    return %c0_i32, %c0_i32_0 : i32, i32
  }
  func.func @transform_3(%arg0: i32) -> (i32, i32) {
    %c0_i32 = arith.constant 0 : i32
    %c0_i32_0 = arith.constant 0 : i32
    %c0_i32_1 = arith.constant 0 : i32
    return %c0_i32, %c0_i32_0 : i32, i32
  }
  func.func @transform_4(%arg0: i32) -> (i32, i32) {
    %c0_i32 = arith.constant 0 : i32
    %c0_i32_0 = arith.constant 0 : i32
    %c0_i32_1 = arith.constant 0 : i32
    return %c0_i32, %c0_i32_0 : i32, i32
  }
  func.func @transform_5(%arg0: i32) -> (i32, i32) {
    %c0_i32 = arith.constant 0 : i32
    %c0_i32_0 = arith.constant 0 : i32
    %c0_i32_1 = arith.constant 0 : i32
    return %c0_i32, %c0_i32_0 : i32, i32
  }
  func.func @transform_6(%arg0: i32) -> (i32, i32, i32) {
    %c0_i32 = arith.constant 0 : i32
    %c0_i32_0 = arith.constant 0 : i32
    %c0_i32_1 = arith.constant 0 : i32
    return %arg0, %c0_i32, %c0_i32_0 : i32, i32, i32
  }
}

</mosaic_0001>

<bundles_post_ra>
// kernel: encoder_forward.1
= control target key start
LH: loop header
LB: loop body
LE: loop exit
PB: predicated region body
PF: predicated region fallthrough
CT: control target
= control target key end

     0   :  { %s1258_s21 = smov 0   ;;  %s1888_s0 = inlined_call_operand.vmem [shape: f32[2,4,256], index: 0, kind: input, shape index: {}]   ;;  %s1889_s1 = inlined_call_operand.vmem [shape: s32[2,256], index: 1, kind: input, shape index: {}]   ;;  %s1890_s2 = inlined_call_operand.vmem [shape: f32[8,36], index: 2, kind: input, shape index: {}]   ;;  %s1891_s3 = inlined_call_operand.vmem [shape: f32[8,1], index: 3, kind: input, shape index: {}]   ;;  %s1892_s4 = inlined_call_operand.vmem [shape: f32[16,72], index: 4, kind: input, shape index: {}]   ;;  %s1893_s5 = inlined_call_operand.vmem [shape: f32[16,1], index: 5, kind: input, shape index: {}]   ;;  %s1894_s6 = inlined_call_operand.vmem [shape: f32[2,16,9], index: 6, kind: output, shape index: {}]  }
   0x1 LB: > { %s1113_s22 = sadd.s32 4294967295, %s1195_s21   ;;  %p1117_p0 = scmp.ge.s32.totalorder %s1195_s21, 1  ;;  %s1195_s21 = sphi %s1258_s21, %s16_s21  }
   0x2   : > { %p212_p1 = scmp.lt.s32.totalorder %s1195_s21, 3 }
   0x4   : > { %p213_p2 = pnand %p1117_p0, %p212_p1 }
   0x5   : > { %p242_p3 = scmp.lt.s32.totalorder (!%p213_p2), %s1113_s22, 1  ;;  %s1197_s27 = smov (!%p213_p2), 16  }
   0x6   : > { %216 = sbr.rel (%p213_p2) target bundleno = 1222 (0x4c6), region = 44  ;;  %s1198_s28 = smov (!%p213_p2), 15  }
   0x7   : > { %s1199_s29 = smov (!%p213_p2), 1   ;;  %s1200_s30 = smov (!%p213_p2), 127  }
   0x8   : > { %s1201_s7 = smov (!%p213_p2), 113   ;;  %s1202_s8 = smov (!%p213_p2), 112  }
   0x9   : > { %s1203_s9 = smov (!%p213_p2), 17   ;;  %s1204_s10 = smov (!%p213_p2), 111  }
   0xa   : > { %s1206_s19 = smov (!%p213_p2), 94   ;;  %s1207_s20 = smov (!%p213_p2), 96  }
   0xb   : > { %s1953_s22 = smov (!%p242_p3, %s1113_s22), 1  ;;  %v1287_v19 = vld [vmem:[%s1889_s1] ss:$2 sm:$0x3]  ;;  %v1205_v23 = vmov 0   ;;  %v274_v25 = vlaneseq  ;;  %s1209_s24 = smov 126  }
   0xc   : > { %s1133_s23 = sshll.u32 %s1953_s22, 3  ;;  %v1292_v20 = vld [vmem:[%s1889_s1 + $0x1] ss:$2 sm:$0x3]  ;;  %v256_v21 = vadd.s32 4294967295, %v1287_v19  ;;  %1169 = vset.pattern.permute.xlu1 %v1205_v23  ;;  %1170 = vset.pattern.permute.xlu0 %v1205_v23  ;;  %vm346_vm6 = vcmp.ge.s32.totalorder %v1287_v19, 0 }
   0xd   : > { %s246_s26 = scalar_lea.vmem %s1888_s0, %s1133_s23  ;;  %vm289_vm0 = vcmp.ge.s32.totalorder %v1292_v20, 0  ;;  %vm290_vm1 = vcmp.lt.s32.totalorder %v1292_v20, 16  ;;  %vm347_vm7 = vcmp.lt.s32.totalorder %v1287_v19, 16  ;;  %v1322_v29 = vand.u32 127, %v274_v25  ;;  %s1208_s23 = smov 98  }
   0xe   : > { %v255_v0 = vld [vmem:[%s246_s26] sm:$0xff]  ;;  %vm1297_vm2 = vmand %vm289_vm0, %vm290_vm1  ;;  %vm257_vm3 = vcmp.ge.s32.totalorder %v256_v21, 0  ;;  %vm258_vm4 = vcmp.lt.s32.totalorder %v256_v21, 16  ;;  %v260_v30 = vadd.s32 4294967295, %v1292_v20  ;;  %v320_v55 = vadd.s32 1, %v1292_v20  ;;  %s1210_s25 = smov 2  }
   0xf   : > { %265 = vst [vmem:[#allocation1] ss:$2 sm:$0xff] %v255_v0  ;;  %vm1303_vm5 = vmand %vm257_vm3, %vm258_vm4  ;;  %vm301_vm13 = vcmp.lt.s32.totalorder %v1322_v29, 16  ;;  %v420_v62 = vadd.s32 1, %v1287_v19  ;;  %s1211_s26 = smov 30   ;;  %s1214_s13 = smov 124  }
  0x10   : > { %vm304_vm8 = vmand %vm1303_vm5, %vm1297_vm2  ;;  %vm261_vm0 = vcmp.ge.s32.totalorder %v260_v30, 0  ;;  %vm262_vm1 = vcmp.lt.s32.totalorder %v260_v30, 16  ;;  %s1215_s14 = smov 64   ;;  %s1216_s15 = smov 60  }
  0x11   : > { %vm1313_vm9 = vmand %vm346_vm6, %vm347_vm7  ;;  %v305_v28 = vsel %vm304_vm8, 1, %v1205_v23  ;;  %vm358_vm6 = vcmp.lt.s32.totalorder %v1322_v29, 1  ;;  %s1217_s16 = smov 125   ;;  %s1218_s17 = smov 122  }
  0x12   : > { %vm377_vm10 = vmand %vm1313_vm9, %vm1297_vm2  ;;  %v306_v32 = vperm.slane %v305_v28, 0  ;;  %v307_v33 = vperm.slane %v305_v28, 1  ;;  %s1219_s18 = smov 67  }
  0x13   : > { %v378_v31 = vsel %vm377_vm10, 1, %v1205_v23  ;;  %vm1341_vm3 = vmand %vm261_vm0, %vm262_vm1  ;;  %vm321_vm10 = vcmp.ge.s32.totalorder %v320_v55, 0  ;;  %vm421_vm1 = vcmp.ge.s32.totalorder %v420_v62, 0 }
  0x14   : > { %v379_v34 = vperm.slane %v378_v31, 0  ;;  %v380_v35 = vperm.slane %v378_v31, 1  ;;  %vm308_vm14 = vcmp.eq.s32.totalorder %v306_v32, 1  ;;  %vm309_vm15 = vcmp.eq.s32.totalorder %v307_v33, 1  ;;  %vm361_vm4 = vmand %vm1313_vm9, %vm1341_vm3  ;;  %v507_v32 = vld [vmem:[%s1891_s3] sm:$0xff] }
  0x15   : > { %v362_v50 = vsel %vm361_vm4, 1, %v1205_v23  ;;  %vm422_vm4 = vcmp.lt.s32.totalorder %v420_v62, 16 }
  0x16   : > { %v266_v1 = vld.sshfl [vmem:[#allocation1] sm:$0xff pattern:$0x75316420]  ;;  %v267_v2 = vld.sshfl [vmem:[#allocation1 + $0x8] sm:$0xff pattern:$0x75316420] }
  0x17   : > { %292 = vst [vmem:[#allocation1] ss:$2 sm:$0xff] %v255_v0  ;;  %vm1326_vm11 = vcmp.eq.s32.totalorder %v379_v34, 1  ;;  %vm1330_vm12 = vcmp.eq.s32.totalorder %v380_v35, 1  ;;  %v363_v51 = vperm.slane %v362_v50, 0  ;;  %v364_v52 = vperm.slane %v362_v50, 1 }
  0x19   : > { %vm365_vm7 = vcmp.eq.s32.totalorder %v363_v51, 1  ;;  %vm366_vm8 = vcmp.eq.s32.totalorder %v364_v52, 1 }
  0x1e   : > { %v293_v3 = vld.sshfl [vmem:[#allocation1] sm:$0xff pattern:$0x75316420]  ;;  %v294_v4 = vld.sshfl [vmem:[#allocation1 + $0x8] sm:$0xff pattern:$0x75316420] }
  0x1f   : > { %324 = vst [vmem:[#allocation1] ss:$2 sm:$0xff] %v255_v0  ;;  %297 = vrot.lane.b32.xlu1 %v293_v3, %s1197_s27  ;;  %299 = vrot.lane.b32.xlu2 %v294_v4, %s1197_s27  ;;  %s1212_s27 = smov 32  }
  0x26   : > { %v325_v5 = vld.sshfl [vmem:[#allocation1] sm:$0xff pattern:$0x75316420]  ;;  %v326_v6 = vld.sshfl [vmem:[#allocation1 + $0x8] sm:$0xff pattern:$0x75316420] }
  0x27   : > { %329 = vrot.lane.b32.xlu0 %v325_v5, %s1198_s28  ;;  %349 = vst [vmem:[#allocation1] ss:$2 sm:$0xff] %v255_v0 }
  0x2e   : > { %v351_v7 = vld.sshfl [vmem:[#allocation1 + $0x8] sm:$0xff pattern:$0x75316420]  ;;  %v350_v8 = vld.sshfl [vmem:[#allocation1] sm:$0xff pattern:$0x75316420] }
  0x2f   : > { %356 = vrot.lane.b32.xlu0 %v351_v7, %s1199_s29  ;;  %383 = vst [vmem:[#allocation1] ss:$2 sm:$0xff] %v255_v0  ;;  %354 = vrot.lane.b32.xlu2 %v350_v8, %s1199_s29 }
  0x36   : > { %v1273_v9 = vld.sshfl [vmem:[#allocation1] sm:$0xff pattern:$0x75316420]  ;;  %v1275_v10 = vld.sshfl [vmem:[#allocation1 + $0x8] sm:$0xff pattern:$0x75316420] }
  0x37   : > { %392 = vst [vmem:[#allocation1] ss:$2 sm:$0xff] %v255_v0  ;;  %v388_v38 = vsel %vm1326_vm11, %v1273_v9, 0.0  ;;  %v389_v39 = vsel %vm1330_vm12, %v1275_v10, 0.0 }
  0x38   : > { %390 = vst [vmem:[#allocation2 + $0x20] sm:$0xf] %v388_v38 }
  0x39   : > { %391 = vst [vmem:[#allocation2 + $0x8] sm:$0xf] %v389_v39 }
  0x3e   : > { %v393_v11 = vld.sshfl [vmem:[#allocation1] sm:$0xff pattern:$0x75316420]  ;;  %v394_v12 = vld.sshfl [vmem:[#allocation1 + $0x8] sm:$0xff pattern:$0x75316420] }
  0x3f   : > { %424 = vst [vmem:[#allocation1] ss:$2 sm:$0xff] %v255_v0  ;;  %397 = vrot.lane.b32.xlu2 %v393_v11, %s1200_s30 }
  0x46   : > { %v425_v13 = vld.sshfl [vmem:[#allocation1] sm:$0xff pattern:$0x75316420]  ;;  %v426_v14 = vld.sshfl [vmem:[#allocation1 + $0x8] sm:$0xff pattern:$0x75316420] }
  0x47   : > { %429 = vrot.lane.b32.xlu0 %v425_v13, %s1201_s7  ;;  %431 = vrot.lane.b32.xlu1 %v426_v14, %s1201_s7  ;;  %446 = vst [vmem:[#allocation1] ss:$2 sm:$0xff] %v255_v0 }
  0x48   : > { %399 = vrot.lane.b32.xlu2 %v394_v12, %s1200_s30 }
  0x4e   : > { %v447_v15 = vld.sshfl [vmem:[#allocation1] sm:$0xff pattern:$0x75316420]  ;;  %v448_v16 = vld.sshfl [vmem:[#allocation1 + $0x8] sm:$0xff pattern:$0x75316420] }
  0x4f   : > { %451 = vrot.lane.b32.xlu0 %v447_v15, %s1202_s8  ;;  %474 = vst [vmem:[#allocation1] ss:$2 sm:$0xff] %v255_v0 }
  0x50   : > { %270 = vrot.lane.b32.xlu2 %v266_v1, %s1203_s9 }
  0x56   : > { %v475_v17 = vld.sshfl [vmem:[#allocation1] sm:$0xff pattern:$0x75316420]  ;;  %v476_v18 = vld.sshfl [vmem:[#allocation1 + $0x8] sm:$0xff pattern:$0x75316420] }
  0x57   : > { %453 = vrot.lane.b32.xlu0 %v448_v16, %s1202_s8  ;;  %479 = vrot.lane.b32.xlu1 %v475_v17, %s1204_s10 }
  0x5f   : > { %272 = vrot.lane.b32.xlu0 %v267_v2, %s1203_s9  ;;  %481 = vrot.lane.b32.xlu1 %v476_v18, %s1204_s10 }
  0x67   : > { %331 = vrot.lane.b32.xlu1 %v326_v6, %s1198_s28  ;;  %s1213_s28 = smov 34  }
  0x6f   : > { %510 = vperm.xlu1 %1169, %v507_v32  }
  0x79   : > { %v300_v26 = vpop.permute.xlu2 %299 }
  0x89   : > { %v355_v43 = vpop.permute.xlu2 %354 }
  0x91   : > { %v298_v40 = vpop.permute.xlu1 %297 }
  0x92   : > { %v302_v41 = vsel %vm301_vm13, %v298_v40, %v300_v26  ;;  %v303_v42 = vsel %vm301_vm13, %v300_v26, %v298_v40  ;;  %vm322_vm13 = vcmp.lt.s32.totalorder %v320_v55, 16 }
  0x93   : > { %v310_v44 = vsel %vm308_vm14, %v303_v42, 0.0  ;;  %v311_v45 = vsel %vm309_vm15, %v302_v41, 0.0  ;;  %vm1355_vm14 = vmand %vm321_vm10, %vm322_vm13  ;;  %vm401_vm15 = vcmp.lt.s32.totalorder %v1322_v29, 127  ;;  %vm433_vm13 = vcmp.lt.s32.totalorder %v1322_v29, 113 }
  0x94   : > { %v314_v47 = vrot.slane %v310_v44, 4  ;;  %v315_v48 = vrot.slane %v311_v45, 4  ;;  %vm404_vm0 = vmand %vm1313_vm9, %vm1355_vm14 }
  0x95   : > { %v405_v0 = vsel %vm404_vm0, 1, %v1205_v23 }
  0x96   : > { %318 = vst [vmem:[#allocation2] sm:$0xf0] %v314_v47  ;;  %v406_v2 = vperm.slane %v405_v0, 0  ;;  %v407_v3 = vperm.slane %v405_v0, 1 }
  0x97   : > { %319 = vst [vmem:[#allocation2 + $0x38] sm:$0xf0] %v315_v48 }
  0x99   : > { %v1349_v49 = vpop.permute.xlu0 %329  ;;  %v398_v53 = vpop.permute.xlu2 %397 }
  0xa1   : > { %v357_v54 = vpop.permute.xlu0 %356 }
  0xa2   : > { %v359_v56 = vsel %vm358_vm6, %v355_v43, %v357_v54  ;;  %v360_v57 = vsel %vm358_vm6, %v357_v54, %v355_v43  ;;  %v400_v1 = vpop.permute.xlu2 %399  ;;  %vm408_vm6 = vcmp.eq.s32.totalorder %v406_v2, 1 }
  0xa3   : > { %v367_v58 = vsel %vm365_vm7, %v360_v57, 0.0  ;;  %v368_v59 = vsel %vm366_vm8, %v359_v56, 0.0  ;;  %v402_v4 = vsel %vm401_vm15, %v398_v53, %v400_v1  ;;  %v403_v5 = vsel %vm401_vm15, %v400_v1, %v398_v53  ;;  %vm1369_vm8 = vmand %vm421_vm1, %vm422_vm4  ;;  %v767_v53 = vld [vmem:[%s1893_s5 + $0x8] sm:$0xff] }
  0xa4   : > { %v371_v60 = vrot.slane %v367_v58, 4  ;;  %v372_v61 = vrot.slane %v368_v59, 4  ;;  %vm409_vm7 = vcmp.eq.s32.totalorder %v407_v3, 1  ;;  %v410_v6 = vsel %vm408_vm6, %v402_v4, 0.0  ;;  %vm436_vm10 = vmand %vm1369_vm8, %vm1341_vm3 }
  0xa5   : > { %v411_v7 = vsel %vm409_vm7, %v403_v5, 0.0  ;;  %v414_v9 = vrot.slane %v410_v6, 4  ;;  %v437_v11 = vsel %vm436_vm10, 1, %v1205_v23  ;;  %vm458_vm4 = vmand %vm1369_vm8, %vm1297_vm2  ;;  %vm455_vm10 = vcmp.lt.s32.totalorder %v1322_v29, 112 }
  0xa6   : > { %375 = vst [vmem:[#allocation2 + $0x78] sm:$0xf0] %v371_v60  ;;  %v415_v10 = vrot.slane %v411_v7, 4  ;;  %v438_v12 = vperm.slane %v437_v11, 0  ;;  %v439_v13 = vperm.slane %v437_v11, 1  ;;  %v459_v26 = vsel %vm458_vm4, 1, %v1205_v23  ;;  %vm279_vm6 = vmand %vm1303_vm5, %vm1341_vm3 }
  0xa7   : > { %376 = vst [vmem:[#allocation2 + $0x58] sm:$0xf0] %v372_v61  ;;  %v460_v28 = vperm.slane %v459_v26, 0  ;;  %v461_v30 = vperm.slane %v459_v26, 1  ;;  %vm486_vm7 = vmand %vm1369_vm8, %vm1355_vm14  ;;  %v280_v31 = vsel %vm279_vm6, 1, %v1205_v23  ;;  %vm276_vm8 = vcmp.lt.s32.totalorder %v1322_v29, 17 }
  0xa8   : > { %418 = vst [vmem:[#allocation2 + $0x20] sm:$0xf0] %v414_v9  ;;  %vm440_vm0 = vcmp.eq.s32.totalorder %v438_v12, 1  ;;  %vm441_vm1 = vcmp.eq.s32.totalorder %v439_v13, 1  ;;  %v487_v35 = vsel %vm486_vm7, 1, %v1205_v23  ;;  %v281_v42 = vperm.slane %v280_v31, 0  ;;  %vm336_vm3 = vmand %vm1303_vm5, %vm1355_vm14 }
  0xa9   : > { %419 = vst [vmem:[#allocation2 + $0x8] sm:$0xf0] %v415_v10  ;;  %v282_v45 = vperm.slane %v280_v31, 1  ;;  %v488_v46 = vperm.slane %v487_v35, 0  ;;  %v489_v47 = vperm.slane %v487_v35, 1  ;;  %v337_v54 = vsel %vm336_vm3, 1, %v1205_v23 }
  0xaa   : > { %v271_v48 = vpop.permute.xlu2 %270  ;;  %vm283_vm4 = vcmp.eq.s32.totalorder %v281_v42, 1  ;;  %v338_v63 = vperm.slane %v337_v54, 0  ;;  %v339_v0 = vperm.slane %v337_v54, 1  ;;  %vm333_vm5 = vcmp.lt.s32.totalorder %v1322_v29, 15  ;;  %v506_v13 = vld [vmem:[%s1890_s2] sm:$0xff] }
  0xab   : > { %vm1408_vm6 = vcmp.eq.s32.totalorder %v282_v45, 1  ;;  %vm1412_vm7 = vcmp.eq.s32.totalorder %v488_v46, 1  ;;  %vm517_vm3 = vcmask 1043456   ;;  %v691_v54 = vadd.s32 2, %v1287_v19 }
  0xac   : > { %vm340_vm14 = vcmp.eq.s32.totalorder %v338_v63, 1 }
  0xaf   : > { %v500_v10 = vld [vmem:[#allocation2 + $0x20] sm:$0xff] }
  0xb0   : > { %v501_v11 = vld [vmem:[#allocation2 + $0x8] sm:$0xff] }
  0xb9   : > { %v430_v14 = vpop.permute.xlu0 %429  ;;  %v432_v15 = vpop.permute.xlu1 %431 }
  0xba   : > { %v434_v16 = vsel %vm433_vm13, %v430_v14, %v432_v15  ;;  %v435_v17 = vsel %vm433_vm13, %v432_v15, %v430_v14  ;;  %vm462_vm13 = vcmp.eq.s32.totalorder %v460_v28, 1 }
  0xbb   : > { %v442_v18 = vsel %vm440_vm0, %v434_v16, 0.0  ;;  %v443_v21 = vsel %vm441_vm1, %v435_v17, 0.0  ;;  %vm463_vm0 = vcmp.eq.s32.totalorder %v461_v30, 1  ;;  %vm483_vm1 = vcmp.lt.s32.totalorder %v1322_v29, 111 }
  0xbc   : > { %444 = vst [vmem:[#allocation2 + $0x70] sm:$0xf] %v442_v18 }
  0xbd   : > { %445 = vst [vmem:[#allocation2 + $0x80] sm:$0xf] %v443_v21 }
  0xc1   : > { %v452_v25 = vpop.permute.xlu0 %451 }
  0xc9   : > { %v454_v33 = vpop.permute.xlu0 %453  ;;  %v480_v34 = vpop.permute.xlu1 %479 }
  0xca   : > { %v456_v38 = vsel %vm455_vm10, %v452_v25, %v454_v33  ;;  %v457_v39 = vsel %vm455_vm10, %v454_v33, %v452_v25 }
  0xcb   : > { %v464_v40 = vsel %vm462_vm13, %v456_v38, 0.0  ;;  %v465_v41 = vsel %vm463_vm0, %v457_v39, 0.0  ;;  %vm1416_vm13 = vcmp.eq.s32.totalorder %v489_v47, 1  ;;  %vm341_vm0 = vcmp.eq.s32.totalorder %v339_v0, 1 }
  0xcc   : > { %v468_v43 = vrot.slane %v464_v40, 4  ;;  %v469_v44 = vrot.slane %v465_v41, 4 }
  0xce   : > { %472 = vst [vmem:[#allocation2 + $0x70] sm:$0xf0] %v468_v43 }
  0xcf   : > { %473 = vst [vmem:[#allocation2 + $0x80] sm:$0xf0] %v469_v44 }
  0xd1   : > { %v273_v52 = vpop.permute.xlu0 %272  ;;  %v482_v24 = vpop.permute.xlu1 %481 }
  0xd2   : > { %v277_v55 = vsel %vm276_vm8, %v271_v48, %v273_v52  ;;  %v278_v56 = vsel %vm276_vm8, %v273_v52, %v271_v48  ;;  %v484_v57 = vsel %vm483_vm1, %v480_v34, %v482_v24  ;;  %v485_v58 = vsel %vm483_vm1, %v482_v24, %v480_v34 }
  0xd3   : > { %v285_v59 = vsel %vm283_vm4, %v278_v56, 0.0  ;;  %v286_v60 = vsel %vm1408_vm6, %v277_v55, 0.0  ;;  %v492_v61 = vsel %vm1412_vm7, %v484_v57, 0.0  ;;  %v493_v62 = vsel %vm1416_vm13, %v485_v58, 0.0 }
  0xd4   : > { %287 = vst [vmem:[#allocation2] sm:$0xf] %v285_v59  ;;  %vm513_vm8 = vcmask 293888   ;;  %v632_v24 = vadd.s32 2, %v1292_v20  ;;  %vm693_vm4 = vcmp.lt.s32.totalorder %v691_v54, 16  ;;  %v594_v58 = vadd.s32 4294967294, %v1292_v20 }
  0xd5   : > { %288 = vst [vmem:[#allocation2 + $0x38] sm:$0xf] %v286_v60  ;;  %v502_v8 = vld [vmem:[#allocation2 + $0x70] sm:$0xff] }
  0xd6   : > { %494 = vst [vmem:[#allocation2 + $0x88] sm:$0xf] %v492_v61  ;;  %v503_v9 = vld [vmem:[#allocation2 + $0x80] sm:$0xff] }
  0xd7   : > { %495 = vst [vmem:[#allocation2 + $0x40] sm:$0xf] %v493_v62 }
  0xd9   : > { %v332_v1 = vpop.permute.xlu1 %331 }
  0xda   : > { %v334_v2 = vsel %vm333_vm5, %v1349_v49, %v332_v1  ;;  %v335_v3 = vsel %vm333_vm5, %v332_v1, %v1349_v49 }
  0xdb   : > { %v342_v4 = vsel %vm340_vm14, %v335_v3, 0.0  ;;  %v343_v5 = vsel %vm341_vm0, %v334_v2, 0.0  ;;  %v496_v14 = vld [vmem:[#allocation2] sm:$0xff]  ;;  %vm595_vm14 = vcmp.ge.s32.totalorder %v594_v58, 0  ;;  %vm596_vm0 = vcmp.lt.s32.totalorder %v594_v58, 16 }
  0xdc   : > { %344 = vst [vmem:[#allocation2 + $0x78] sm:$0xf] %v342_v4  ;;  %v497_v15 = vld [vmem:[#allocation2 + $0x38] sm:$0xff] }
  0xdd   : > { %345 = vst [vmem:[#allocation2 + $0x58] sm:$0xf] %v343_v5  ;;  %v504_v6 = vld [vmem:[#allocation2 + $0x88] sm:$0xf] }
  0xde   : > { %1123 = vmatpush.msk.msra.mxu0 %vm517_vm3, %v504_v6  ;;  %v505_v7 = vld [vmem:[#allocation2 + $0x40] sm:$0xf] }
  0xdf   : > { %1125 = vmatpush.msk.msra.mxu1 %vm517_vm3, %v505_v7  ;;  %vm1511_vm3 = vmand %vm595_vm14, %vm596_vm0  ;;  %vm699_vm0 = vcmp.lt.s32.totalorder %v1322_v29, 98 }
  0xe0   : > { %536 = vmatpush.msra.mxu0 %v502_v8  ;;  %vm660_vm14 = vmand %vm1313_vm9, %vm1511_vm3 }
  0xe1   : > { %556 = vmatpush.msra.mxu1 %v503_v9  ;;  %v511_v16 = vpop.permute.xlu1 %510 }
  0xe2   : > { %537 = vmatpush.msra.mxu0 %v500_v10 }
  0xe3   : > { %557 = vmatpush.msra.mxu1 %v501_v11  ;;  %v498_v12 = vld [vmem:[#allocation2 + $0x78] sm:$0xff] }
  0xe4   : > { %538 = vmatpush.msra.mxu0 %v498_v12  ;;  %v499_v49 = vld [vmem:[#allocation2 + $0x58] sm:$0xff] }
  0xe5   : > { %558 = vmatpush.msra.mxu1 %v499_v49  ;;  %v590_v49 = vadd.s32 4294967294, %v1287_v19 }
  0xe6   : > { %539 = vmatpush.msra.mxu0 %v496_v14 }
  0xe7   : > { %559 = vmatpush.msra.mxu1 %v497_v15  ;;  %1124 = vmatmul.msk.f32.vlgmr.msra.gmra.mxu0 %vm513_vm8, %v506_v13  ;;  %v661_v15 = vsel %vm660_vm14, 1, %v1205_v23 }
  0xe8   : > { %1126 = vmatmul.msk.f32.vlgmr.msra.gmra.mxu1 %vm513_vm8, %v506_v13 }
 0x164   : > { %v541_v17 = vpop.f32.mrf.mxu0 }
 0x165   : > { %v561_v18 = vpop.f32.mrf.mxu1  ;;  %v542_v21 = vadd.f32 %v541_v17, %v511_v16 }
 0x166   : > { %v562_v25 = vadd.f32 %v561_v18, %v511_v16 }
 0x167   : > { %v564_v26 = vmax.f32 %v542_v21, 0.0 }
 0x168   : > { %v565_v28 = vmax.f32 %v562_v25, 0.0 }
 0x169   : > { %574 = vrot.lane.b32.xlu1 %v564_v26, %s1202_s8  ;;  %566 = vrot.lane.b32.xlu2 %v564_v26, %s1200_s30 }
 0x16a   : > { %568 = vrot.lane.b32.xlu0 %v565_v28, %s1200_s30 }
 0x171   : > { %584 = vrot.lane.b32.xlu1 %v565_v28, %s1204_s10  ;;  %576 = vrot.lane.b32.xlu2 %v565_v28, %s1202_s8 }
 0x172   : > { %582 = vrot.lane.b32.xlu0 %v564_v26, %s1204_s10 }
 0x1c3   : > { %v567_v30 = vpop.permute.xlu2 %566 }
 0x1cb   : > { %v577_v39 = vpop.permute.xlu2 %576 }
 0x1db   : > { %v575_v31 = vpop.permute.xlu1 %574 }
 0x1dc   : > { %v569_v32 = vpop.permute.xlu0 %568  ;;  %v578_v40 = vsel %vm455_vm10, %v575_v31, %v577_v39  ;;  %v579_v41 = vsel %vm455_vm10, %v577_v39, %v575_v31  ;;  %vm634_vm10 = vcmp.lt.s32.totalorder %v632_v24, 16 }
 0x1dd   : > { %v570_v33 = vsel %vm401_vm15, %v567_v30, %v569_v32  ;;  %v571_v34 = vsel %vm401_vm15, %v569_v32, %v567_v30  ;;  %vm633_vm15 = vcmp.ge.s32.totalorder %v632_v24, 0  ;;  %v766_v30 = vld [vmem:[%s1893_s5] sm:$0xff] }
 0x1de   : > { %v572_v35 = vmax.f32 %v564_v26, %v570_v33  ;;  %v573_v38 = vmax.f32 %v565_v28, %v571_v34  ;;  %vm1492_vm6 = vmand %vm633_vm15, %vm634_vm10  ;;  %vm1895_vm15 = vcmp.lt.s32.totalorder %v1322_v29, 94  ;;  %vm716_vm10 = vcmp.lt.s32.totalorder %v1322_v29, 96 }
 0x1df   : > { %v662_v26 = vperm.slane %v661_v15, 0  ;;  %v663_v28 = vperm.slane %v661_v15, 1 }
 0x1e0   : > { %v580_v43 = vmax.f32 %v572_v35, %v578_v40  ;;  %v581_v44 = vmax.f32 %v573_v38, %v579_v41 }
 0x1e3   : > { %v585_v42 = vpop.permute.xlu1 %584 }
 0x1e4   : > { %v583_v45 = vpop.permute.xlu0 %582 }
 0x1e5   : > { %v586_v46 = vsel %vm483_vm1, %v583_v45, %v585_v42  ;;  %v587_v47 = vsel %vm483_vm1, %v585_v42, %v583_v45  ;;  %vm692_vm1 = vcmp.ge.s32.totalorder %v691_v54, 0 }
 0x1e6   : > { %v1455_v48 = vmax.f32 %v580_v43, %v586_v46  ;;  %v1457_v50 = vmax.f32 %v581_v44, %v587_v47  ;;  %vm1496_vm7 = vmand %vm692_vm1, %vm693_vm4 }
 0x1e7   : > { %vm736_vm13 = vmand %vm1496_vm7, %vm1492_vm6 }
 0x1e8   : > { %731 = vrot.lane.b32.xlu0 %v1457_v50, %s1206_s19  ;;  %712 = vrot.lane.b32.xlu1 %v1455_v48, %s1207_s20  ;;  %v670_v51 = vsel %vm1326_vm11, %v1455_v48, 0.0  ;;  %v671_v52 = vsel %vm1330_vm12, %v1457_v50, 0.0  ;;  %vm719_vm5 = vmand %vm1496_vm7, %vm1297_vm2  ;;  %v737_v60 = vsel %vm736_vm13, 1, %v1205_v23 }
 0x1e9   : > { %729 = vrot.lane.b32.xlu2 %v1455_v48, %s1206_s19  ;;  %672 = vst [vmem:[#allocation2 + $0x88] sm:$0xff] %v670_v51  ;;  %v720_v61 = vsel %vm719_vm5, 1, %v1205_v23  ;;  %v738_v20 = vperm.slane %v737_v60, 0  ;;  %v739_v63 = vperm.slane %v737_v60, 1  ;;  %vm702_vm8 = vmand %vm1496_vm7, %vm1511_vm3 }
 0x1ea   : > { %673 = vst [vmem:[#allocation2 + $0x40] sm:$0xff] %v671_v52  ;;  %v721_v0 = vperm.slane %v720_v61, 0  ;;  %v722_v1 = vperm.slane %v720_v61, 1  ;;  %v703_v5 = vsel %vm702_vm8, 1, %v1205_v23  ;;  %vm681_vm7 = vmand %vm1313_vm9, %vm1492_vm6 }
 0x1eb   : > { %vm740_vm1 = vcmp.eq.s32.totalorder %v738_v20, 1  ;;  %vm741_vm4 = vcmp.eq.s32.totalorder %v739_v63, 1  ;;  %v704_v11 = vperm.slane %v703_v5, 0  ;;  %v705_v12 = vperm.slane %v703_v5, 1 }
 0x1ec   : > { %vm1521_vm13 = vcmp.eq.s32.totalorder %v721_v0, 1  ;;  %vm724_vm5 = vcmp.eq.s32.totalorder %v722_v1, 1  ;;  %v682_v14 = vsel %vm681_vm7, 1, %v1205_v23  ;;  %vm657_vm7 = vcmp.lt.s32.totalorder %v1322_v29, 2 }
 0x1ed   : > { %vm706_vm8 = vcmp.eq.s32.totalorder %v704_v11, 1  ;;  %v683_v21 = vperm.slane %v682_v14, 0  ;;  %v684_v25 = vperm.slane %v682_v14, 1 }
 0x1ef   : > { %vm1565_vm14 = vcmp.eq.s32.totalorder %v684_v25, 1 }
 0x1f0   : > { %695 = vrot.lane.b32.xlu0 %v1455_v48, %s1208_s23  ;;  %697 = vrot.lane.b32.xlu1 %v1457_v50, %s1208_s23  ;;  %s1222_s23 = smov 3  }
 0x1f1   : > { %714 = vrot.lane.b32.xlu2 %v1457_v50, %s1207_s20 }
 0x1f8   : > { %676 = vrot.lane.b32.xlu0 %v1457_v50, %s1209_s24  ;;  %653 = vrot.lane.b32.xlu1 %v1455_v48, %s1210_s25 }
 0x1f9   : > { %674 = vrot.lane.b32.xlu2 %v1455_v48, %s1209_s24 }
 0x200   : > { %636 = vrot.lane.b32.xlu0 %v1455_v48, %s1211_s26  ;;  %638 = vrot.lane.b32.xlu1 %v1457_v50, %s1211_s26 }
 0x201   : > { %655 = vrot.lane.b32.xlu2 %v1457_v50, %s1210_s25 }
 0x208   : > { %617 = vrot.lane.b32.xlu0 %v1457_v50, %s1212_s27  ;;  %598 = vrot.lane.b32.xlu1 %v1455_v48, %s1213_s28 }
 0x209   : > { %615 = vrot.lane.b32.xlu2 %v1455_v48, %s1212_s27 }
 0x210   : > { %775 = vperm.xlu1 %1169, %v767_v53   ;;  %770 = vperm.xlu0 %1170, %v766_v30  }
 0x211   : > { %600 = vrot.lane.b32.xlu2 %v1457_v50, %s1213_s28 }
 0x243   : > { %v730_v55 = vpop.permute.xlu2 %729 }
 0x24b   : > { %v715_v59 = vpop.permute.xlu2 %714 }
 0x253   : > { %v675_v6 = vpop.permute.xlu2 %674 }
 0x25a   : > { %v732_v3 = vpop.permute.xlu0 %731  ;;  %v713_v4 = vpop.permute.xlu1 %712 }
 0x25b   : > { %v734_v7 = vsel %vm1895_vm15, %v730_v55, %v732_v3  ;;  %v735_v8 = vsel %vm1895_vm15, %v732_v3, %v730_v55  ;;  %v717_v9 = vsel %vm716_vm10, %v713_v4, %v715_v59  ;;  %v718_v10 = vsel %vm716_vm10, %v715_v59, %v713_v4  ;;  %v656_v27 = vpop.permute.xlu2 %655 }
 0x25c   : > { %1171 = vmatpush.msk.msra.mxu2 %vm740_vm1, %v734_v7  ;;  %1172 = vmatpush.msk.msra.mxu3 %vm741_vm4, %v735_v8  ;;  %vm707_vm1 = vcmp.eq.s32.totalorder %v705_v12, 1  ;;  %vm591_vm4 = vcmp.ge.s32.totalorder %v590_v49, 0  ;;  %vm592_vm15 = vcmp.lt.s32.totalorder %v590_v49, 16  ;;  %v764_v8 = vld [vmem:[%s1892_s4] sm:$0xff] }
 0x25e   : > { %1173 = vmatpush.msk.msra.mxu2 %vm1521_vm13, %v717_v9  ;;  %1174 = vmatpush.msk.msra.mxu3 %vm724_vm5, %v718_v10  ;;  %vm1548_vm13 = vmand %vm591_vm4, %vm592_vm15  ;;  %vm678_vm5 = vcmp.lt.s32.totalorder %v1322_v29, 126  ;;  %vm1561_vm15 = vcmp.eq.s32.totalorder %v683_v21, 1  ;;  %vm640_vm4 = vcmp.lt.s32.totalorder %v1322_v29, 30  ;;  %v765_v9 = vld [vmem:[%s1892_s4 + $0x8] sm:$0xff] }
 0x25f   : > { %vm643_vm9 = vmand %vm1548_vm13, %vm1492_vm6  ;;  %vm1573_vm6 = vcmp.eq.s32.totalorder %v663_v28, 1 }
 0x260   : > { %v644_v39 = vsel %vm643_vm9, 1, %v1205_v23 }
 0x261   : > { %v645_v46 = vperm.slane %v644_v39, 0  ;;  %v646_v47 = vperm.slane %v644_v39, 1 }
 0x262   : > { %v696_v19 = vpop.permute.xlu0 %695  ;;  %v698_v13 = vpop.permute.xlu1 %697 }
 0x263   : > { %v700_v16 = vsel %vm699_vm0, %v696_v19, %v698_v13  ;;  %v701_v17 = vsel %vm699_vm0, %v698_v13, %v696_v19  ;;  %vm1569_vm0 = vcmp.eq.s32.totalorder %v662_v26, 1  ;;  %v616_v51 = vpop.permute.xlu2 %615  ;;  %vm1605_vm9 = vcmp.eq.s32.totalorder %v645_v46, 1 }
 0x264   : > { %1175 = vmatpush.msk.msra.mxu2 %vm706_vm8, %v700_v16  ;;  %1176 = vmatpush.msk.msra.mxu3 %vm707_vm1, %v701_v17  ;;  %vm622_vm8 = vmand %vm1548_vm13, %vm1297_vm2  ;;  %vm1609_vm2 = vcmp.eq.s32.totalorder %v646_v47, 1 }
 0x265   : > { %vm605_vm1 = vmand %vm1548_vm13, %vm1511_vm3 }
 0x26a   : > { %v677_v34 = vpop.permute.xlu0 %676  ;;  %v654_v38 = vpop.permute.xlu1 %653 }
 0x26b   : > { %v679_v40 = vsel %vm678_vm5, %v675_v6, %v677_v34  ;;  %v680_v41 = vsel %vm678_vm5, %v677_v34, %v675_v6  ;;  %v658_v42 = vsel %vm657_vm7, %v654_v38, %v656_v27  ;;  %v659_v43 = vsel %vm657_vm7, %v656_v27, %v654_v38  ;;  %v601_v59 = vpop.permute.xlu2 %600 }
 0x26c   : > { %v666_v44 = vsel %vm1569_vm0, %v659_v43, 0.0  ;;  %v667_v45 = vsel %vm1573_vm6, %v658_v42, 0.0  ;;  %1177 = vmatpush.msk.msra.mxu2 %vm1561_vm15, %v679_v40  ;;  %1178 = vmatpush.msk.msra.mxu3 %vm1565_vm14, %v680_v41  ;;  %vm778_vm14 = vcmask 588800  }
 0x26d   : > { %668 = vst [vmem:[#allocation2 + $0x70] sm:$0xff] %v666_v44 }
 0x26e   : > { %1179 = vmatpush.msk.msra.mxu2 %vm1326_vm11, %v1455_v48  ;;  %1180 = vmatpush.msk.msra.mxu3 %vm1330_vm12, %v1457_v50  ;;  %669 = vst [vmem:[#allocation2 + $0x80] sm:$0xff] %v667_v45  ;;  %v623_v48 = vsel %vm622_vm8, 1, %v1205_v23  ;;  %v606_v50 = vsel %vm605_vm1, 1, %v1205_v23  ;;  %vm619_vm11 = vcmp.lt.s32.totalorder %v1322_v29, 32  ;;  %vm602_vm12 = vcmp.lt.s32.totalorder %v1322_v29, 34 }
 0x26f   : > { %v624_v56 = vperm.slane %v623_v48, 0  ;;  %v625_v57 = vperm.slane %v623_v48, 1  ;;  %v607_v58 = vperm.slane %v606_v50, 0  ;;  %v608_v23 = vperm.slane %v606_v50, 1 }
 0x270   : > { %1181 = vmatpush.msk.msra.mxu2 %vm1569_vm0, %v659_v43  ;;  %1182 = vmatpush.msk.msra.mxu3 %vm1573_vm6, %v658_v42  ;;  %vm1947_vm0 = vcmp.lt.s32.totalorder %v1322_v29, 94  ;;  %vm908_vm1 = vcmp.lt.s32.totalorder %v1322_v29, 64 }
 0x271   : > { %vm626_vm3 = vcmp.eq.s32.totalorder %v624_v56, 1  ;;  %vm1629_vm13 = vcmp.eq.s32.totalorder %v625_v57, 1  ;;  %vm1633_vm7 = vcmp.eq.s32.totalorder %v607_v58, 1  ;;  %vm1637_vm15 = vcmp.eq.s32.totalorder %v608_v23, 1  ;;  %vm1948_vm6 = vmmov %vm1947_vm0 }
 0x272   : > { %v637_v36 = vpop.permute.xlu0 %636  ;;  %v639_v37 = vpop.permute.xlu1 %638  ;;  %vm1949_vm8 = vmmov %vm1947_vm0 }
 0x273   : > { %v641_v53 = vsel %vm640_vm4, %v637_v36, %v639_v37  ;;  %v642_v24 = vsel %vm640_vm4, %v639_v37, %v637_v36  ;;  %vm925_vm4 = vcmp.lt.s32.totalorder %v1322_v29, 60 }
 0x274   : > { %v649_v54 = vsel %vm1605_vm9, %v642_v24, 0.0  ;;  %v650_v55 = vsel %vm1609_vm2, %v641_v53, 0.0  ;;  %1183 = vmatpush.msk.msra.mxu2 %vm1605_vm9, %v642_v24  ;;  %1184 = vmatpush.msk.msra.mxu3 %vm1609_vm2, %v641_v53  ;;  %vm947_vm9 = vcmp.lt.s32.totalorder %v1322_v29, 125  ;;  %vm963_vm2 = vcmp.lt.s32.totalorder %v1322_v29, 122 }
 0x275   : > { %651 = vst [vmem:[#allocation2 + $0x20] sm:$0xff] %v649_v54 }
 0x276   : > { %652 = vst [vmem:[#allocation2 + $0x8] sm:$0xff] %v650_v55 }
 0x27a   : > { %v618_v62 = vpop.permute.xlu0 %617  ;;  %v599_v63 = vpop.permute.xlu1 %598 }
 0x27b   : > { %v620_v0 = vsel %vm619_vm11, %v616_v51, %v618_v62  ;;  %v621_v1 = vsel %vm619_vm11, %v618_v62, %v616_v51  ;;  %v603_v2 = vsel %vm602_vm12, %v599_v63, %v601_v59  ;;  %v604_v3 = vsel %vm602_vm12, %v601_v59, %v599_v63 }
 0x27c   : > { %v628_v4 = vsel %vm626_vm3, %v621_v1, 0.0  ;;  %v629_v5 = vsel %vm1629_vm13, %v620_v0, 0.0  ;;  %v611_v6 = vsel %vm1633_vm7, %v604_v3, 0.0  ;;  %v612_v7 = vsel %vm1637_vm15, %v603_v2, 0.0  ;;  %1185 = vmatpush.msk.msra.mxu2 %vm626_vm3, %v621_v1  ;;  %1186 = vmatpush.msk.msra.mxu3 %vm1629_vm13, %v620_v0 }
 0x27d   : > { %630 = vst [vmem:[#allocation2 + $0x78] sm:$0xff] %v628_v4  ;;  %vm934_vm11 = vcmp.eq.s32.totalorder %v1322_v29, 0  ;;  %vm950_vm12 = vcmp.eq.s32.totalorder %v1322_v29, 1  ;;  %vm979_vm3 = vcmp.lt.s32.totalorder %v1322_v29, 67  ;;  %vm966_vm13 = vcmp.eq.s32.totalorder %v1322_v29, 2 }
 0x27e   : > { %631 = vst [vmem:[#allocation2 + $0x58] sm:$0xff] %v629_v5  ;;  %1187 = vmatpush.msk.msra.mxu2 %vm1633_vm7, %v604_v3  ;;  %1188 = vmatpush.msk.msra.mxu3 %vm1637_vm15, %v603_v2  ;;  %vm1010_vm7 = vcmp.lt.s32.totalorder %v1322_v29, 61  ;;  %vm982_vm15 = vcmp.eq.s32.totalorder %v1322_v29, 3 }
 0x27f   : > { %613 = vst [vmem:[#allocation2] sm:$0xff] %v611_v6  ;;  %1127 = vmatmul.msk.f32.vlgmr.msra.gmra.mxu2 %vm778_vm14, %v764_v8  ;;  %1129 = vmatmul.msk.f32.vlgmr.msra.gmra.mxu3 %vm778_vm14, %v764_v8 }
 0x280   : > { %614 = vst [vmem:[#allocation2 + $0x38] sm:$0xff] %v612_v7 }
 0x282   : > { %v771_v10 = vpop.permute.xlu0 %770  ;;  %v776_v15 = vpop.permute.xlu1 %775 }
 0x287   : > { %1128 = vmatmul.msk.f32.gmra.mxu2 %vm778_vm14, %v765_v9  ;;  %1130 = vmatmul.msk.f32.gmra.mxu3 %vm778_vm14, %v765_v9  ;;  %vm997_vm14 = vcmp.eq.s32.totalorder %v1322_v29, 4 }
 0x302   : > { %v802_v11 = vpop.f32.mrf.mxu2  ;;  %v825_v12 = vpop.f32.mrf.mxu3 }
 0x303   : > { %v803_v49 = vadd.f32 %v802_v11, %v771_v10  ;;  %v826_v19 = vadd.f32 %v825_v12, %v771_v10 }
 0x305   : > { %v831_v13 = vmax.f32 %v803_v49, 0.0  ;;  %v832_v14 = vmax.f32 %v826_v19, 0.0 }
 0x307   : > { %855 = vrot.lane.b32.xlu0 %v832_v14, %s1207_s20  ;;  %851 = vrot.lane.b32.xlu1 %v831_v13, %s1207_s20 }
 0x308   : > { %835 = vrot.lane.b32.xlu2 %v831_v13, %s1209_s24 }
 0x30a   : > { %v828_v16 = vpop.f32.mrf.mxu3  ;;  %v805_v27 = vpop.f32.mrf.mxu2 }
 0x30b   : > { %v829_v17 = vadd.f32 %v828_v16, %v776_v15  ;;  %v806_v21 = vadd.f32 %v805_v27, %v776_v15 }
 0x30d   : > { %v834_v18 = vmax.f32 %v829_v17, 0.0  ;;  %v833_v25 = vmax.f32 %v806_v21, 0.0 }
 0x30f   : > { %841 = vrot.lane.b32.xlu0 %v834_v18, %s1209_s24  ;;  %871 = vrot.lane.b32.xlu1 %v832_v14, %s1206_s19 }
 0x310   : > { %839 = vrot.lane.b32.xlu2 %v832_v14, %s1209_s24 }
 0x317   : > { %869 = vrot.lane.b32.xlu0 %v833_v25, %s1206_s19  ;;  %837 = vrot.lane.b32.xlu1 %v833_v25, %s1209_s24  ;;  %s1134_s24 = sshll.u32 %s1953_s22, 4 }
 0x318   : > { %867 = vrot.lane.b32.xlu2 %v831_v13, %s1206_s19  ;;  %s1836_s27 = scalar_lea.vmem %s1894_s6, %s1134_s24 }
 0x31f   : > { %857 = vrot.lane.b32.xlu1 %v834_v18, %s1207_s20 }
 0x320   : > { %853 = vrot.lane.b32.xlu2 %v833_v25, %s1207_s20  ;;  %s1221_s20 = smov 6  }
 0x328   : > { %873 = vrot.lane.b32.xlu2 %v834_v18, %s1206_s19  ;;  %s1220_s19 = smov 61  }
 0x362   : > { %v836_v26 = vpop.permute.xlu2 %835 }
 0x36a   : > { %v840_v28 = vpop.permute.xlu2 %839 }
 0x36b   : > { %v843_v32 = vsel %vm678_vm5, %v836_v26, %v840_v28  ;;  %v845_v33 = vsel %vm678_vm5, %v840_v28, %v836_v26 }
 0x36c   : > { %v847_v38 = vmax.f32 %v831_v13, %v843_v32  ;;  %v848_v39 = vmax.f32 %v832_v14, %v845_v33 }
 0x372   : > { %v868_v40 = vpop.permute.xlu2 %867 }
 0x379   : > { %v852_v30 = vpop.permute.xlu1 %851  ;;  %v856_v31 = vpop.permute.xlu0 %855 }
 0x37a   : > { %v859_v34 = vsel %vm716_vm10, %v852_v30, %v856_v31  ;;  %v861_v35 = vsel %vm716_vm10, %v856_v31, %v852_v30  ;;  %v854_v22 = vpop.permute.xlu2 %853 }
 0x37b   : > { %v863_v41 = vmax.f32 %v847_v38, %v859_v34  ;;  %v864_v42 = vmax.f32 %v848_v39, %v861_v35 }
 0x381   : > { %v872_v43 = vpop.permute.xlu1 %871  ;;  %v842_v51 = vpop.permute.xlu0 %841 }
 0x382   : > { %v875_v44 = vsel %vm1947_vm0, %v868_v40, %v872_v43  ;;  %v877_v45 = vsel %vm1948_vm6, %v872_v43, %v868_v40  ;;  %v874_v56 = vpop.permute.xlu2 %873  ;;  %vm1896_vm6 = vcmp.eq.s32.totalorder %v1322_v29, 5 }
 0x383   : > { %v879_v46 = vmax.f32 %v863_v41, %v875_v44  ;;  %v880_v47 = vmax.f32 %v864_v42, %v877_v45 }
 0x385   : > { %887 = vrot.lane.b32.xlu2 %v880_v47, %s1214_s13  ;;  %900 = vrot.lane.b32.xlu1 %v879_v46, %s1215_s14 }
 0x386   : > { %883 = vrot.lane.b32.xlu0 %v879_v46, %s1214_s13 }
 0x389   : > { %v838_v52 = vpop.permute.xlu1 %837  ;;  %v870_v48 = vpop.permute.xlu0 %869 }
 0x38a   : > { %v844_v36 = vsel %vm678_vm5, %v838_v52, %v842_v51  ;;  %v846_v37 = vsel %vm678_vm5, %v842_v51, %v838_v52  ;;  %v876_v23 = vsel %vm1949_vm8, %v870_v48, %v874_v56  ;;  %vm1950_vm5 = vmmov %vm1947_vm0  ;;  %vm1026_vm0 = vcmp.lt.s32.totalorder %v1322_v29, 6 }
 0x38b   : > { %v849_v50 = vmax.f32 %v833_v25, %v844_v36  ;;  %v850_v53 = vmax.f32 %v834_v18, %v846_v37  ;;  %v878_v59 = vsel %vm1950_vm5, %v874_v56, %v870_v48  ;;  %vm1029_vm8 = vcmp.eq.s32.totalorder %v1322_v29, 6 }
 0x38c   : > { %vm1042_vm5 = vcmp.lt.s32.totalorder %v1322_v29, 3 }
 0x38d   : > { %917 = vrot.lane.b32.xlu2 %v879_v46, %s1216_s15  ;;  %921 = vrot.lane.b32.xlu1 %v880_v47, %s1216_s15 }
 0x38e   : > { %904 = vrot.lane.b32.xlu0 %v880_v47, %s1215_s14 }
 0x391   : > { %v858_v24 = vpop.permute.xlu1 %857 }
 0x392   : > { %v860_v54 = vsel %vm716_vm10, %v854_v22, %v858_v24  ;;  %v862_v55 = vsel %vm716_vm10, %v858_v24, %v854_v22  ;;  %vm891_vm10 = vcmp.lt.s32.totalorder %v1322_v29, 124 }
 0x393   : > { %v865_v57 = vmax.f32 %v849_v50, %v860_v54  ;;  %v866_v58 = vmax.f32 %v850_v53, %v862_v55 }
 0x395   : > { %v881_v60 = vmax.f32 %v865_v57, %v876_v23  ;;  %v1697_v61 = vmax.f32 %v866_v58, %v878_v59 }
 0x397   : > { %889 = vrot.lane.b32.xlu0 %v1697_v61, %s1214_s13  ;;  %902 = vrot.lane.b32.xlu2 %v881_v60, %s1215_s14 }
 0x398   : > { %885 = vrot.lane.b32.xlu1 %v881_v60, %s1214_s13 }
 0x39f   : > { %919 = vrot.lane.b32.xlu0 %v881_v60, %s1216_s15  ;;  %923 = vrot.lane.b32.xlu2 %v1697_v61, %s1216_s15 }
 0x3a0   : > { %906 = vrot.lane.b32.xlu1 %v1697_v61, %s1215_s14 }
 0x3df   : > { %v888_v20 = vpop.permute.xlu2 %887 }
 0x3e7   : > { %v918_v8 = vpop.permute.xlu2 %917 }
 0x3f1   : > { %v903_v15 = vpop.permute.xlu2 %902 }
 0x3f7   : > { %v901_v62 = vpop.permute.xlu1 %900 }
 0x3f8   : > { %v884_v63 = vpop.permute.xlu0 %883 }
 0x3f9   : > { %v892_v0 = vsel %vm891_vm10, %v884_v63, %v888_v20  ;;  %v894_v1 = vsel %vm891_vm10, %v888_v20, %v884_v63  ;;  %v924_v26 = vpop.permute.xlu2 %923 }
 0x3fa   : > { %v896_v2 = vmax.f32 %v879_v46, %v892_v0  ;;  %v897_v3 = vmax.f32 %v880_v47, %v894_v1 }
 0x3ff   : > { %v922_v4 = vpop.permute.xlu1 %921 }
 0x400   : > { %v905_v5 = vpop.permute.xlu0 %904  ;;  %v926_v11 = vsel %vm925_vm4, %v918_v8, %v922_v4  ;;  %v928_v12 = vsel %vm925_vm4, %v922_v4, %v918_v8 }
 0x401   : > { %v909_v6 = vsel %vm908_vm1, %v901_v62, %v905_v5  ;;  %v911_v7 = vsel %vm908_vm1, %v905_v5, %v901_v62 }
 0x402   : > { %v913_v9 = vmax.f32 %v896_v2, %v909_v6  ;;  %v914_v10 = vmax.f32 %v897_v3, %v911_v7 }
 0x404   : > { %v1719_v49 = vmax.f32 %v913_v9, %v926_v11  ;;  %v1721_v19 = vmax.f32 %v914_v10, %v928_v12 }
 0x406   : > { %943 = vrot.lane.b32.xlu2 %v1721_v19, %s1217_s16  ;;  %955 = vrot.lane.b32.xlu1 %v1719_v49, %s1218_s17  ;;  %v937_v24 = vsel %vm934_vm11, %v1719_v49, 0.0 }
 0x407   : > { %939 = vrot.lane.b32.xlu0 %v1719_v49, %s1217_s16 }
 0x409   : > { %v890_v14 = vpop.permute.xlu0 %889 }
 0x40a   : > { %v886_v13 = vpop.permute.xlu1 %885 }
 0x40b   : > { %v893_v17 = vsel %vm891_vm10, %v886_v13, %v890_v14  ;;  %v895_v28 = vsel %vm891_vm10, %v890_v14, %v886_v13  ;;  %vm1045_vm10 = vcmp.eq.s32.totalorder %v1322_v29, 7 }
 0x40c   : > { %v898_v27 = vmax.f32 %v881_v60, %v893_v17  ;;  %v899_v33 = vmax.f32 %v1697_v61, %v895_v28 }
 0x40e   : > { %971 = vrot.lane.b32.xlu2 %v1719_v49, %s1219_s18  ;;  %975 = vrot.lane.b32.xlu1 %v1721_v19, %s1219_s18 }
 0x40f   : > { %959 = vrot.lane.b32.xlu0 %v1721_v19, %s1218_s17 }
 0x411   : > { %v920_v21 = vpop.permute.xlu0 %919 }
 0x412   : > { %v907_v16 = vpop.permute.xlu1 %906  ;;  %v927_v30 = vsel %vm925_vm4, %v920_v21, %v924_v26  ;;  %v929_v35 = vsel %vm925_vm4, %v924_v26, %v920_v21  ;;  %vm1050_vm4 = vcmp.eq.s32.totalorder %v1322_v29, 8 }
 0x413   : > { %v910_v18 = vsel %vm908_vm1, %v903_v15, %v907_v16  ;;  %v912_v32 = vsel %vm908_vm1, %v907_v16, %v903_v15 }
 0x414   : > { %v915_v25 = vmax.f32 %v898_v27, %v910_v18  ;;  %v916_v34 = vmax.f32 %v899_v33, %v912_v32 }
 0x416   : > { %991 = vrot.lane.b32.xlu2 %v1721_v19, %s1215_s14  ;;  %1002 = vrot.lane.b32.xlu1 %v1719_v49, %s1220_s19  ;;  %v1755_v31 = vmax.f32 %v915_v25, %v927_v30  ;;  %v1767_v38 = vmax.f32 %v916_v34, %v929_v35 }
 0x417   : > { %987 = vrot.lane.b32.xlu0 %v1719_v49, %s1215_s14 }
 0x418   : > { %v938_v12 = vsel %vm934_vm11, %v1755_v31, 0.0 }
 0x41e   : > { %1018 = vrot.lane.b32.xlu2 %v1719_v49, %s1221_s20  ;;  %1022 = vrot.lane.b32.xlu1 %v1721_v19, %s1221_s20 }
 0x41f   : > { %1006 = vrot.lane.b32.xlu0 %v1721_v19, %s1220_s19 }
 0x426   : > { %957 = vrot.lane.b32.xlu2 %v1755_v31, %s1218_s17  ;;  %941 = vrot.lane.b32.xlu1 %v1755_v31, %s1217_s16 }
 0x427   : > { %1034 = vrot.lane.b32.xlu0 %v1719_v49, %s1222_s23 }
 0x42e   : > { %977 = vrot.lane.b32.xlu2 %v1767_v38, %s1219_s18  ;;  %961 = vrot.lane.b32.xlu1 %v1767_v38, %s1218_s17 }
 0x42f   : > { %945 = vrot.lane.b32.xlu0 %v1767_v38, %s1217_s16 }
 0x436   : > { %1004 = vrot.lane.b32.xlu2 %v1755_v31, %s1220_s19  ;;  %989 = vrot.lane.b32.xlu1 %v1755_v31, %s1215_s14 }
 0x437   : > { %973 = vrot.lane.b32.xlu0 %v1755_v31, %s1219_s18 }
 0x43e   : > { %1024 = vrot.lane.b32.xlu2 %v1767_v38, %s1221_s20  ;;  %1008 = vrot.lane.b32.xlu1 %v1767_v38, %s1220_s19 }
 0x43f   : > { %993 = vrot.lane.b32.xlu0 %v1767_v38, %s1215_s14 }
 0x446   : > { %1038 = vrot.lane.b32.xlu2 %v1721_v19, %s1222_s23  ;;  %1036 = vrot.lane.b32.xlu1 %v1755_v31, %s1222_s23 }
 0x447   : > { %1020 = vrot.lane.b32.xlu0 %v1755_v31, %s1221_s20 }
 0x44f   : > { %1040 = vrot.lane.b32.xlu0 %v1767_v38, %s1222_s23 }
 0x460   : > { %v944_v39 = vpop.permute.xlu2 %943 }
 0x468   : > { %v972_v40 = vpop.permute.xlu2 %971 }
 0x470   : > { %v992_v41 = vpop.permute.xlu2 %991 }
 0x478   : > { %v956_v42 = vpop.permute.xlu1 %955  ;;  %v1019_v43 = vpop.permute.xlu2 %1018 }
 0x479   : > { %v940_v44 = vpop.permute.xlu0 %939 }
 0x47a   : > { %v948_v50 = vsel %vm947_vm9, %v940_v44, %v944_v39 }
 0x47b   : > { %v953_v54 = vsel %vm950_vm12, %v948_v50, %v937_v24 }
 0x480   : > { %v976_v45 = vpop.permute.xlu1 %975  ;;  %v958_v46 = vpop.permute.xlu2 %957 }
 0x481   : > { %v960_v47 = vpop.permute.xlu0 %959  ;;  %v980_v56 = vsel %vm979_vm3, %v972_v40, %v976_v45 }
 0x482   : > { %v964_v53 = vsel %vm963_vm2, %v956_v42, %v960_v47 }
 0x483   : > { %v969_v57 = vsel %vm966_vm13, %v964_v53, %v953_v54 }
 0x484   : > { %v985_v61 = vsel %vm982_vm15, %v980_v56, %v969_v57 }
 0x488   : > { %v1003_v51 = vpop.permute.xlu1 %1002  ;;  %v978_v22 = vpop.permute.xlu2 %977 }
 0x489   : > { %v988_v52 = vpop.permute.xlu0 %987 }
 0x48a   : > { %v995_v59 = vsel %vm908_vm1, %v988_v52, %v992_v41 }
 0x48b   : > { %v1000_v62 = vsel %vm997_vm14, %v995_v59, %v985_v61 }
 0x490   : > { %v1023_v36 = vpop.permute.xlu1 %1022  ;;  %v1005_v37 = vpop.permute.xlu2 %1004 }
 0x491   : > { %v1007_v48 = vpop.permute.xlu0 %1006  ;;  %v1027_v20 = vsel %vm1026_vm0, %v1019_v43, %v1023_v36 }
 0x492   : > { %v1011_v60 = vsel %vm1010_vm7, %v1003_v51, %v1007_v48 }
 0x493   : > { %v1016_v63 = vsel %vm1896_vm6, %v1011_v60, %v1000_v62  ;;  %vm1055_vm6 = vcmask 72704  }
 0x494   : > { %v1032_v2 = vsel %vm1029_vm8, %v1027_v20, %v1016_v63 }
 0x498   : > { %v1025_v55 = vpop.permute.xlu2 %1024  ;;  %v942_v23 = vpop.permute.xlu1 %941 }
 0x499   : > { %v1035_v58 = vpop.permute.xlu0 %1034 }
 0x4a0   : > { %v1039_v0 = vpop.permute.xlu2 %1038  ;;  %v962_v5 = vpop.permute.xlu1 %961 }
 0x4a1   : > { %v946_v1 = vpop.permute.xlu0 %945  ;;  %v1043_v3 = vsel %vm1042_vm5, %v1035_v58, %v1039_v0  ;;  %v965_v13 = vsel %vm963_vm2, %v958_v46, %v962_v5 }
 0x4a2   : > { %v1048_v4 = vsel %vm1045_vm10, %v1043_v3, %v1032_v2  ;;  %v949_v10 = vsel %vm947_vm9, %v942_v23, %v946_v1  ;;  %vm1951_vm9 = vcmp.eq.s32.totalorder %v1322_v29, 5 }
 0x4a3   : > { %v1053_v6 = vsel %vm1050_vm4, %v1721_v19, %v1048_v4  ;;  %v954_v49 = vsel %vm950_vm12, %v949_v10, %v938_v12 }
 0x4a4   : > { %1056 = vst.msk [vmem:[%s1836_s27] sm:$0xff] %vm1055_vm6, %v1053_v6  ;;  %v970_v16 = vsel %vm966_vm13, %v965_v13, %v954_v49 }
 0x4a8   : > { %v990_v8 = vpop.permute.xlu1 %989 }
 0x4a9   : > { %v974_v7 = vpop.permute.xlu0 %973 }
 0x4aa   : > { %v981_v14 = vsel %vm979_vm3, %v974_v7, %v978_v22 }
 0x4ab   : > { %v986_v17 = vsel %vm982_vm15, %v981_v14, %v970_v16 }
 0x4b0   : > { %v1009_v11 = vpop.permute.xlu1 %1008 }
 0x4b1   : > { %v994_v9 = vpop.permute.xlu0 %993  ;;  %v1012_v27 = vsel %vm1010_vm7, %v1005_v37, %v1009_v11 }
 0x4b2   : > { %v996_v15 = vsel %vm908_vm1, %v990_v8, %v994_v9 }
 0x4b3   : > { %v1001_v18 = vsel %vm997_vm14, %v996_v15, %v986_v17 }
 0x4b4   : > { %v1017_v25 = vsel %vm1951_vm9, %v1012_v27, %v1001_v18 }
 0x4b8   : > { %v1037_v26 = vpop.permute.xlu1 %1036 }
 0x4b9   : > { %v1021_v19 = vpop.permute.xlu0 %1020 }
 0x4ba   : > { %v1028_v21 = vsel %vm1026_vm0, %v1021_v19, %v1025_v55 }
 0x4bb   : > { %v1033_v30 = vsel %vm1029_vm8, %v1028_v21, %v1017_v25 }
 0x4c1   : > { %v1041_v28 = vpop.permute.xlu0 %1040 }
 0x4c2   : > { %v1044_v31 = vsel %vm1042_vm5, %v1037_v26, %v1041_v28 }
 0x4c3   : > { %v1049_v32 = vsel %vm1045_vm10, %v1044_v31, %v1033_v30 }
 0x4c4   : > { %v1054_v33 = vsel %vm1050_vm4, %v1767_v38, %v1049_v32 }
 0x4c5   : > { %1057 = vst.msk [vmem:[%s1836_s27 + $0x8] sm:$0xff] %vm1055_vm6, %v1054_v33 }
 0x4c6 PF: > { %s16_s21 = sadd.s32 1, %s1195_s21  }
 0x4c7   : > { %p13_p4 = scmp.ge.s32.totalorder %s16_s21, 4  }
 0x4c9   :  { %15 = sbr.rel (!%p13_p4) target bundleno = 1 (0x1), region = 75 }

</bundles_post_ra>
